<compile_context>
chip_gen: v6e
topology: v6e:2x2x1
jax: 0.10.0
libtpu: 0.0.40
codegen_flags: <defaults>
</compile_context>

<pallas_src>
import functools

import jax
import jax.numpy as jnp
from jax import lax
from jax.experimental import pallas as pl
from jax.experimental.pallas import tpu as pltpu


def combine_loss_kernel(e_all_ref, logits_ref, t_row_ref, t_col_ref, sq_col_ref,
                        out_ref, *, alpha, margin, row_tile):
    i = pl.program_id(0)
    TB = row_tile
    B = e_all_ref.shape[0]
    C = logits_ref.shape[-1]

    # Row tile sliced from the resident full-embedding block (no duplicate HBM
    # stream for the lhs of the gram).
    row0 = pl.multiple_of(i * TB, TB)
    e_rows = e_all_ref[pl.ds(row0, TB), :]           # [TB, D]  native dtype -> MXU
    e_all = e_all_ref[...]                           # [B,  D]  resident across grid
    logits = logits_ref[...].astype(jnp.float32)     # [TB, C]
    t_rows = t_row_ref[...]                          # [TB, 1] int32
    t_cols = t_col_ref[...]                          # [1,  B] int32 (lane-major)
    sq_cols = sq_col_ref[...]                        # [1,  B] f32   (lane-major)

    # ---- siamese (batch-all contrastive) partial for this row tile ----
    # Row |e|^2 computed in-kernel (XLU reduce has slack; one fewer input DMA).
    e_rows_f32 = e_rows.astype(jnp.float32)
    sq_rows = jnp.sum(e_rows_f32 * e_rows_f32, axis=-1, keepdims=True)   # [TB, 1]

    # Contract both operands on their last dim (same NT pattern flash-attention
    # uses for q @ k^T) -> no e_all transpose materialized.
    gram = lax.dot_general(
        e_rows, e_all,
        dimension_numbers=(((1,), (1,)), ((), ())),
        preferred_element_type=jnp.float32)          # [TB, B]

    d2 = jnp.maximum(sq_rows + sq_cols - 2.0 * gram, 0.0)

    # Diagonal is analytically zero; force it to zero so MXU/VPU rounding cannot
    # leak into the same-class term. Single [TB,B] iota; row index from [TB,1].
    row_idx = lax.broadcasted_iota(jnp.int32, (TB, 1), 0) + i * TB
    col_idx = lax.broadcasted_iota(jnp.int32, (TB, B), 1)
    d2 = jnp.where(col_idx == row_idx, 0.0, d2)

    d = jnp.sqrt(d2)                                 # EUP
    hinge = jnp.maximum(margin - d, 0.0)
    # Boolean select (no bool->f32 cast, no blend arithmetic); 0.5 folded into
    # the static scalar at the bottom.
    pair = jnp.where(t_rows == t_cols, d2, hinge * hinge)
    pair_sum = jnp.sum(pair, keepdims=True)          # (1, 1)

    # ---- cross-entropy partial for this row tile ----
    m = jnp.max(logits, axis=-1, keepdims=True)
    lse = m + jnp.log(jnp.sum(jnp.exp(logits - m), axis=-1, keepdims=True))   # [TB,1]
    cls_iota = lax.broadcasted_iota(jnp.int32, (TB, C), 1)
    tgt_logit = jnp.sum(jnp.where(cls_iota == t_rows, logits, 0.0),
                        axis=-1, keepdims=True)                               # [TB,1]
    ce_sum = jnp.sum(lse - tgt_logit, keepdims=True)                          # (1, 1)

    # ---- per-tile partial of the alpha-blend (static denominators) ----
    partial = ((alpha / B) * ce_sum
               + (0.5 * (1.0 - alpha) / (B * (B - 1))) * pair_sum)
    # Lane-dense (8,128) output tile (unmasked vst); wrapper reads [:, 0, 0].
    out_ref[...] = jnp.broadcast_to(partial, out_ref.shape)


def _pick_row_tile(B, sublane):
    # Prefer 256-row tiles (fills the 2x256 v6e/v7x MXU; 2x128 tiles on v5e),
    # fall back to smaller sublane-aligned tiles, else a single full-size tile.
    for t in (256, 128, 64, 32, 16, 8):
        if B % t == 0 and t % sublane == 0:
            return t
    return B


def combine_loss(embedds, classes, targets, *, alpha=0.1, margin=1.0,
                 row_tile=None, vmem_limit_bytes=48 * 1024 * 1024):
    B, D = embedds.shape
    C = classes.shape[1]
    # Sublane packing of the second-to-last block dim depends on dtype width
    # (f32: 8, bf16: 16, int8/fp8: 32).
    sublane = {4: 8, 2: 16, 1: 32}[jnp.dtype(embedds.dtype).itemsize]
    if row_tile is None:
        row_tile = _pick_row_tile(B, sublane)
    assert B % row_tile == 0, (B, row_tile)
    assert row_tile % sublane == 0 or row_tile == B, (row_tile, sublane)
    num_tiles = B // row_tile

    # Tiny glue: raw int32 targets in both orientations (no one-hot) and the
    # lane-major column |e|^2 (row |e|^2 is computed inside the kernel).
    t = targets.astype(jnp.int32)
    t_row = t.reshape(B, 1)
    t_col = t.reshape(1, B)
    e32 = embedds.astype(jnp.float32)
    sq_col = jnp.sum(e32 * e32, axis=-1).reshape(1, B)

    grid_spec = pltpu.PrefetchScalarGridSpec(
        num_scalar_prefetch=0,
        grid=(num_tiles,),
        in_specs=[
            pl.BlockSpec((B, D), lambda i: (0, 0)),         # full embeddings, resident
            pl.BlockSpec((row_tile, C), lambda i: (i, 0)),  # logits row tile
            pl.BlockSpec((row_tile, 1), lambda i: (i, 0)),  # targets (rows)
            pl.BlockSpec((1, B), lambda i: (0, 0)),         # targets (cols, lane-major)
            pl.BlockSpec((1, B), lambda i: (0, 0)),         # |e|^2  (cols, lane-major)
        ],
        # Independent per-row-tile partial outputs -> the grid axis can be
        # "parallel" (v7x megacore) and there is no serial f32 accumulator.
        out_specs=pl.BlockSpec((None, 8, 128), lambda i: (i, 0, 0)),
    )

    partials = pl.pallas_call(
        functools.partial(combine_loss_kernel, alpha=float(alpha),
                          margin=float(margin), row_tile=row_tile),
        out_shape=jax.ShapeDtypeStruct((num_tiles, 8, 128), jnp.float32),
        grid_spec=grid_spec,
        compiler_params=pltpu.CompilerParams(
            dimension_semantics=("parallel",),
            # <= 48 MiB keeps v7x's 64 MiB VMEM safe; raise on v5e/v6e (128 MiB)
            # for large B*D so e_all stays resident with full-size tiles.
            vmem_limit_bytes=vmem_limit_bytes,
        ),
    )(embedds, classes, t_row, t_col, sq_col)

    # TODO(synk): for vocab-scale C or B*D beyond the VMEM budget, add a column
    # tile grid axis over e_all / t_col / sq_col and an online logsumexp over C.
    return jnp.sum(partials[:, 0, 0])


def combine_loss_ref(embedds, classes, targets, *, alpha=0.1, margin=1.0):
    """Pure-JAX reference for validation."""
    e = embedds.astype(jnp.float32)
    logits = classes.astype(jnp.float32)
    B = e.shape[0]
    sq = jnp.sum(e * e, -1)
    d2 = jnp.maximum(sq[:, None] + sq[None, :] - 2.0 * e @ e.T, 0.0)
    d = jnp.sqrt(d2)
    same = (targets[:, None] == targets[None, :]).astype(jnp.float32)
    offdiag = 1.0 - jnp.eye(B, dtype=jnp.float32)
    pair = 0.5 * (same * d2 + (1.0 - same) * jnp.maximum(margin - d, 0.0) ** 2)
    siamese = jnp.sum(pair * offdiag) / jnp.sum(offdiag)
    lse = jax.nn.logsumexp(logits, axis=-1)
    ce = jnp.mean(lse - jnp.take_along_axis(logits, targets[:, None], axis=1)[:, 0])
    return ce * alpha + siamese * (1.0 - alpha)


if __name__ == "__main__":
    B, D, C = 128, 32, 8
    key = jax.random.PRNGKey(0)
    k1, k2, k3 = jax.random.split(key, 3)
    embedds = jax.random.normal(k1, (B, D), dtype=jnp.float32)
    classes = jax.random.normal(k2, (B, C), dtype=jnp.float32)
    targets = jax.random.randint(k3, (B,), 0, C, dtype=jnp.int32)

    ref = combine_loss_ref(embedds, classes, targets)

    # Default tiling (single 128-row tile) plus an explicit 2-tile split to
    # exercise the multi-tile / diagonal-offset / partial-sum path.
    out_single = jax.block_until_ready(combine_loss(embedds, classes, targets))
    out_tiled = jax.block_until_ready(
        combine_loss(embedds, classes, targets, row_tile=64))

    for out in (out_single, out_tiled):
        assert jnp.isfinite(out), "non-finite loss"
        assert jnp.allclose(out, ref, rtol=1e-4, atol=1e-4), (out, ref)
    print("KERNEL_OK")
</pallas_src>

<mosaic_0001>
module attributes {stable_mosaic.version = 11 : i64} {
  func.func @combine_loss_kernel(%arg0: i32, %arg1: memref<128x32xf32, #tpu.memory_space<vmem>>, %arg2: memref<128x8xf32, #tpu.memory_space<vmem>>, %arg3: memref<128x1xi32, #tpu.memory_space<vmem>>, %arg4: memref<1x128xi32, #tpu.memory_space<vmem>>, %arg5: memref<1x128xf32, #tpu.memory_space<vmem>>, %arg6: memref<1x8x128xf32, #tpu.memory_space<vmem>>) attributes {dimension_semantics = [#tpu.dimension_semantics<parallel>], iteration_bounds = array<i64: 1>, scalar_prefetch = 0 : i64, scratch_operands = 0 : i64, tpu.core_type = #tpu.core_type<tc>, window_params = [{pipeline_mode = #tpu.pipeline_mode<synchronous>, transform_indices = @transform_0, window_bounds = array<i64: 128, 32>}, {transform_indices = @transform_1, window_bounds = array<i64: 128, 8>}, {transform_indices = @transform_2, window_bounds = array<i64: 128, 1>}, {pipeline_mode = #tpu.pipeline_mode<synchronous>, transform_indices = @transform_3, window_bounds = array<i64: 1, 128>}, {pipeline_mode = #tpu.pipeline_mode<synchronous>, transform_indices = @transform_4, window_bounds = array<i64: 1, 128>}, {transform_indices = @transform_5, window_bounds = array<i64: 1, 8, 128>}]} {
    %c128_i32 = arith.constant 128 : i32
    %0 = arith.muli %arg0, %c128_i32 : i32
    %1 = tpu.assume_multiple %0, 128 : i32
    %2 = arith.index_cast %1 : i32 to index
    %c0 = arith.constant 0 : index
    %3 = vector.load %arg1[%2, %c0] : memref<128x32xf32, #tpu.memory_space<vmem>>, vector<128x32xf32>
    %c0_0 = arith.constant 0 : index
    %c0_1 = arith.constant 0 : index
    %4 = vector.load %arg1[%c0_0, %c0_1] : memref<128x32xf32, #tpu.memory_space<vmem>>, vector<128x32xf32>
    %c0_2 = arith.constant 0 : index
    %c0_3 = arith.constant 0 : index
    %5 = vector.load %arg2[%c0_2, %c0_3] : memref<128x8xf32, #tpu.memory_space<vmem>>, vector<128x8xf32>
    %c0_4 = arith.constant 0 : index
    %c0_5 = arith.constant 0 : index
    %6 = vector.load %arg3[%c0_4, %c0_5] : memref<128x1xi32, #tpu.memory_space<vmem>>, vector<128x1xi32>
    %c0_6 = arith.constant 0 : index
    %c0_7 = arith.constant 0 : index
    %7 = vector.load %arg4[%c0_6, %c0_7] : memref<1x128xi32, #tpu.memory_space<vmem>>, vector<1x128xi32>
    %c0_8 = arith.constant 0 : index
    %c0_9 = arith.constant 0 : index
    %8 = vector.load %arg5[%c0_8, %c0_9] : memref<1x128xf32, #tpu.memory_space<vmem>>, vector<1x128xf32>
    %9 = arith.mulf %3, %3 : vector<128x32xf32>
    %cst = arith.constant dense<0.000000e+00> : vector<128xf32>
    %10 = vector.multi_reduction <add>, %9, %cst [1] : vector<128x32xf32> to vector<128xf32>
    %11 = vector.shape_cast %10 : vector<128xf32> to vector<128x1xf32>
    %cst_10 = arith.constant dense<0.000000e+00> : vector<128x128xf32>
    %12 = tpu.matmul %3, %4, %cst_10 {dimension_numbers = #tpu.dot_dimension_numbers<[1], [1], [0], [0], [0, 0, 1, 0], [], []>} : vector<128x32xf32>, vector<128x32xf32>, vector<128x128xf32> -> vector<128x128xf32>
    %13 = vector.broadcast %11 : vector<128x1xf32> to vector<128x128xf32>
    %14 = vector.broadcast %8 : vector<1x128xf32> to vector<128x128xf32>
    %15 = arith.addf %13, %14 : vector<128x128xf32>
    %cst_11 = arith.constant 2.000000e+00 : f32
    %16 = vector.broadcast %cst_11 : f32 to vector<128x128xf32>
    %17 = arith.mulf %16, %12 : vector<128x128xf32>
    %18 = arith.subf %15, %17 : vector<128x128xf32>
    %cst_12 = arith.constant 0.000000e+00 : f32
    %19 = vector.broadcast %cst_12 : f32 to vector<128x128xf32>
    %20 = arith.maximumf %18, %19 : vector<128x128xf32>
    %21 = tpu.iota {dimensions = array<i32: 0>} : vector<128x1xi32>
    %c128_i32_13 = arith.constant 128 : i32
    %22 = arith.muli %arg0, %c128_i32_13 : i32
    %23 = vector.broadcast %22 : i32 to vector<128x1xi32>
    %24 = arith.addi %21, %23 : vector<128x1xi32>
    %25 = tpu.iota {dimensions = array<i32: 1>} : vector<128x128xi32>
    %26 = vector.broadcast %24 : vector<128x1xi32> to vector<128x128xi32>
    %27 = arith.cmpi eq, %25, %26 : vector<128x128xi32>
    %cst_14 = arith.constant 0.000000e+00 : f32
    %28 = vector.broadcast %cst_14 : f32 to vector<128x128xf32>
    %29 = arith.select %27, %28, %20 : vector<128x128xi1>, vector<128x128xf32>
    %30 = math.sqrt %29 : vector<128x128xf32>
    %cst_15 = arith.constant 1.000000e+00 : f32
    %31 = vector.broadcast %cst_15 : f32 to vector<128x128xf32>
    %32 = arith.subf %31, %30 : vector<128x128xf32>
    %cst_16 = arith.constant 0.000000e+00 : f32
    %33 = vector.broadcast %cst_16 : f32 to vector<128x128xf32>
    %34 = arith.maximumf %32, %33 : vector<128x128xf32>
    %35 = vector.broadcast %6 : vector<128x1xi32> to vector<128x128xi32>
    %36 = vector.broadcast %7 : vector<1x128xi32> to vector<128x128xi32>
    %37 = arith.cmpi eq, %35, %36 : vector<128x128xi32>
    %38 = arith.mulf %34, %34 : vector<128x128xf32>
    %39 = arith.select %37, %29, %38 : vector<128x128xi1>, vector<128x128xf32>
    %40 = vector.shape_cast %39 : vector<128x128xf32> to vector<1x128x128xf32>
    %cst_17 = arith.constant dense<0.000000e+00> : vector<1xf32>
    %41 = vector.multi_reduction <add>, %40, %cst_17 [1, 2] : vector<1x128x128xf32> to vector<1xf32>
    %42 = vector.shape_cast %41 : vector<1xf32> to vector<1x1x1xf32>
    %43 = vector.extract %42[0, 0, 0] : f32 from vector<1x1x1xf32>
    %44 = vector.broadcast %43 : f32 to vector<1x1xf32>
    %cst_18 = arith.constant dense<0xFF800000> : vector<128xf32>
    %45 = vector.multi_reduction <maximumf>, %5, %cst_18 [1] : vector<128x8xf32> to vector<128xf32>
    %46 = vector.shape_cast %45 : vector<128xf32> to vector<128x1xf32>
    %47 = vector.broadcast %46 : vector<128x1xf32> to vector<128x8xf32>
    %48 = arith.subf %5, %47 : vector<128x8xf32>
    %49 = math.exp %48 : vector<128x8xf32>
    %cst_19 = arith.constant dense<0.000000e+00> : vector<128xf32>
    %50 = vector.multi_reduction <add>, %49, %cst_19 [1] : vector<128x8xf32> to vector<128xf32>
    %51 = vector.shape_cast %50 : vector<128xf32> to vector<128x1xf32>
    %52 = math.log %51 : vector<128x1xf32>
    %53 = arith.addf %46, %52 : vector<128x1xf32>
    %54 = tpu.iota {dimensions = array<i32: 1>} : vector<128x8xi32>
    %55 = vector.broadcast %6 : vector<128x1xi32> to vector<128x8xi32>
    %56 = arith.cmpi eq, %54, %55 : vector<128x8xi32>
    %cst_20 = arith.constant 0.000000e+00 : f32
    %57 = vector.broadcast %cst_20 : f32 to vector<128x8xf32>
    %58 = arith.select %56, %5, %57 : vector<128x8xi1>, vector<128x8xf32>
    %cst_21 = arith.constant dense<0.000000e+00> : vector<128xf32>
    %59 = vector.multi_reduction <add>, %58, %cst_21 [1] : vector<128x8xf32> to vector<128xf32>
    %60 = vector.shape_cast %59 : vector<128xf32> to vector<128x1xf32>
    %61 = arith.subf %53, %60 : vector<128x1xf32>
    %62 = vector.shape_cast %61 : vector<128x1xf32> to vector<1x128x1xf32>
    %cst_22 = arith.constant dense<0.000000e+00> : vector<1xf32>
    %63 = vector.multi_reduction <add>, %62, %cst_22 [1, 2] : vector<1x128x1xf32> to vector<1xf32>
    %64 = vector.shape_cast %63 : vector<1xf32> to vector<1x1x1xf32>
    %65 = vector.extract %64[0, 0, 0] : f32 from vector<1x1x1xf32>
    %66 = vector.broadcast %65 : f32 to vector<1x1xf32>
    %cst_23 = arith.constant 7.812500e-04 : f32
    %67 = vector.broadcast %cst_23 : f32 to vector<1x1xf32>
    %68 = arith.mulf %67, %66 : vector<1x1xf32>
    %cst_24 = arith.constant 2.76820865E-5 : f32
    %69 = vector.broadcast %cst_24 : f32 to vector<1x1xf32>
    %70 = arith.mulf %69, %44 : vector<1x1xf32>
    %71 = arith.addf %68, %70 : vector<1x1xf32>
    %72 = vector.shape_cast %71 : vector<1x1xf32> to vector<1x1xf32>
    %73 = vector.broadcast %72 : vector<1x1xf32> to vector<8x128xf32>
    %c0_25 = arith.constant 0 : index
    %c0_26 = arith.constant 0 : index
    %c0_27 = arith.constant 0 : index
    %74 = vector.load %arg6[%c0_25, %c0_26, %c0_27] : memref<1x8x128xf32, #tpu.memory_space<vmem>>, vector<1x8x128xf32>
    %75 = vector.shape_cast %74 : vector<1x8x128xf32> to vector<8x128xf32>
    %76 = vector.shape_cast %73 : vector<8x128xf32> to vector<1x8x128xf32>
    tpu.vector_store %arg6[%c0_25, %c0_26, %c0_27], %76 {strides = array<i32>} : memref<1x8x128xf32, #tpu.memory_space<vmem>>, vector<1x8x128xf32>,
    return
  }
  func.func @transform_0(%arg0: i32) -> (i32, i32) {
    %c0_i32 = arith.constant 0 : i32
    %c0_i32_0 = arith.constant 0 : i32
    %c0_i32_1 = arith.constant 0 : i32
    return %c0_i32, %c0_i32_0 : i32, i32
  }
  func.func @transform_1(%arg0: i32) -> (i32, i32) {
    %c0_i32 = arith.constant 0 : i32
    %c0_i32_0 = arith.constant 0 : i32
    return %arg0, %c0_i32 : i32, i32
  }
  func.func @transform_2(%arg0: i32) -> (i32, i32) {
    %c0_i32 = arith.constant 0 : i32
    %c0_i32_0 = arith.constant 0 : i32
    return %arg0, %c0_i32 : i32, i32
  }
  func.func @transform_3(%arg0: i32) -> (i32, i32) {
    %c0_i32 = arith.constant 0 : i32
    %c0_i32_0 = arith.constant 0 : i32
    %c0_i32_1 = arith.constant 0 : i32
    return %c0_i32, %c0_i32_0 : i32, i32
  }
  func.func @transform_4(%arg0: i32) -> (i32, i32) {
    %c0_i32 = arith.constant 0 : i32
    %c0_i32_0 = arith.constant 0 : i32
    %c0_i32_1 = arith.constant 0 : i32
    return %c0_i32, %c0_i32_0 : i32, i32
  }
  func.func @transform_5(%arg0: i32) -> (i32, i32, i32) {
    %c0_i32 = arith.constant 0 : i32
    %c0_i32_0 = arith.constant 0 : i32
    %c0_i32_1 = arith.constant 0 : i32
    return %arg0, %c0_i32, %c0_i32_0 : i32, i32, i32
  }
}

</mosaic_0001>

<bundles_post_ra>
// kernel: tpu_custom_call.1
= control target key start
LH: loop header
LB: loop body
LE: loop exit
PB: predicated region body
PF: predicated region fallthrough
CT: control target
= control target key end

     0   :  { %vm105_vm0 = vcmask 261120   ;;  %vm802_vm1 = vcmask 64512   ;;  %v1431_v13 = vmov 0   ;;  %s2526_s0 = inlined_call_operand.vmem [shape: f32[128,32], index: 0, kind: input, shape index: {}]   ;;  %s2527_s1 = inlined_call_operand.vmem [shape: f32[128,8], index: 1, kind: input, shape index: {}]   ;;  %s2528_s2 = inlined_call_operand.vmem [shape: s32[128,1], index: 2, kind: input, shape index: {}]   ;;  %s2529_s3 = inlined_call_operand.vmem [shape: s32[1,128], index: 3, kind: input, shape index: {}]   ;;  %s2530_s4 = inlined_call_operand.vmem [shape: f32[1,128], index: 4, kind: input, shape index: {}]   ;;  %s2531_s5 = inlined_call_operand.hbm [shape: f32[1,8,128], index: 5, kind: output, shape index: {}]  }
   0x1   :  { %v1466_v0 = vld [vmem:[%s2526_s0 + $0x78] sm:$0xff]  ;;  %v1471_v1 = vld [vmem:[%s2527_s1 + $0x10] sm:$0xff]  ;;  %v1476_v2 = vld [vmem:[%s2527_s1] sm:$0xff]  ;;  %1312 = vset.pattern.permute.xlu1 %v1431_v13  ;;  %1311 = vset.pattern.permute.xlu0 %v1431_v13 }
   0x2   :  { %1217 = vmatprep.subr.msk.mxu0 %vm105_vm0, %v1466_v0  ;;  %v809_v3 = vsel %vm802_vm1, %v1471_v1, -inf  ;;  %v803_v4 = vsel %vm802_vm1, %v1476_v2, -inf  ;;  %v1487_v5 = vld [vmem:[%s2526_s0 + $0x70] sm:$0xff]  ;;  %v1492_v6 = vld [vmem:[%s2527_s1 + $0x18] sm:$0xff]  ;;  %v1497_v7 = vld [vmem:[%s2527_s1 + $0x8] sm:$0xff]  ;;  %1273 = vmatprep.subr.msk.mxu1 %vm105_vm0, %v1466_v0 }
   0x3   :  { %810 = vmax.xlane.f32.xlu1 %v809_v3  ;;  %804 = vmax.xlane.f32.xlu0 %v803_v4  ;;  %v812_v8 = vsel %vm802_vm1, %v1492_v6, -inf  ;;  %v806_v9 = vsel %vm802_vm1, %v1497_v7, -inf  ;;  %v1514_v10 = vld [vmem:[%s2527_s1 + $0x28] sm:$0xff]  ;;  %v1519_v11 = vld [vmem:[%s2527_s1 + $0x20] sm:$0xff]  ;;  %v1541_v16 = vld [vmem:[%s2527_s1 + $0x38] sm:$0xff] }
   0x4   :  { %1218 = vmatpush3.xpose.msk.msra.mxu0 %vm105_vm0, %v1466_v0  ;;  %1289 = vmatpush3.xpose.msk.msra.mxu1 %vm105_vm0, %v1466_v0  ;;  %v1526_v12 = vld [vmem:[%s2526_s0 + $0x68] sm:$0xff]  ;;  %v818_v14 = vsel %vm802_vm1, %v1514_v10, -inf  ;;  %v815_v15 = vsel %vm802_vm1, %v1519_v11, -inf  ;;  %v1546_v17 = vld [vmem:[%s2527_s1 + $0x30] sm:$0xff]  ;;  %v1553_v18 = vld [vmem:[%s2526_s0 + $0x40] sm:$0xff]  ;;  %v824_v20 = vsel %vm802_vm1, %v1541_v16, -inf }
   0x5   :  { %1219 = vmatprep.subr.msk.mxu0 %vm105_vm0, %v1487_v5  ;;  %1274 = vmatprep.subr.msk.mxu1 %vm105_vm0, %v1487_v5  ;;  %v1558_v19 = vld [vmem:[%s2526_s0 + $0x60] sm:$0xff]  ;;  %v821_v21 = vsel %vm802_vm1, %v1546_v17, -inf  ;;  %v1575_v22 = vld [vmem:[%s2527_s1 + $0x48] sm:$0xff]  ;;  %v1592_v25 = vld [vmem:[%s2526_s0 + $0x58] sm:$0xff] }
   0x6   :  { %1261 = vmatprep.mubr.msk.f32.mxu1 %vm105_vm0, %v1553_v18  ;;  %v1580_v23 = vld [vmem:[%s2527_s1 + $0x40] sm:$0xff]  ;;  %v830_v26 = vsel %vm802_vm1, %v1575_v22, -inf  ;;  %v1609_v28 = vld [vmem:[%s2527_s1 + $0x58] sm:$0xff]  ;;  %v1614_v29 = vld [vmem:[%s2527_s1 + $0x50] sm:$0xff] }
   0x7   :  { %813 = vmax.xlane.f32.xlu1 %v812_v8  ;;  %807 = vmax.xlane.f32.xlu0 %v806_v9  ;;  %v1587_v24 = vld [vmem:[%s2526_s0] sm:$0xff]  ;;  %v827_v27 = vsel %vm802_vm1, %v1580_v23, -inf }
   0x8   :  { %1220 = vmatpush3.xpose.msk.msra.mxu0 %vm105_vm0, %v1487_v5  ;;  %1290 = vmatpush3.xpose.msk.msra.mxu1 %vm105_vm0, %v1487_v5 }
   0x9   :  { %1221 = vmatprep.subr.msk.mxu0 %vm105_vm0, %v1526_v12  ;;  %1275 = vmatprep.subr.msk.mxu1 %vm105_vm0, %v1526_v12 }
   0xa   :  { %1249 = vmatprep.mubr.msk.f32.mxu0 %vm105_vm0, %v1587_v24 }
   0xb   :  { %819 = vmax.xlane.f32.xlu1 %v818_v14  ;;  %816 = vmax.xlane.f32.xlu0 %v815_v15 }
   0xc   :  { %1222 = vmatpush3.xpose.msk.msra.mxu0 %vm105_vm0, %v1526_v12  ;;  %1291 = vmatpush3.xpose.msk.msra.mxu1 %vm105_vm0, %v1526_v12 }
   0xd   :  { %1223 = vmatprep.subr.msk.mxu0 %vm105_vm0, %v1558_v19  ;;  %1276 = vmatprep.subr.msk.mxu1 %vm105_vm0, %v1558_v19 }
   0xf   :  { %825 = vmax.xlane.f32.xlu1 %v824_v20  ;;  %822 = vmax.xlane.f32.xlu0 %v821_v21 }
  0x10   :  { %1224 = vmatpush3.xpose.msk.msra.mxu0 %vm105_vm0, %v1558_v19  ;;  %1292 = vmatpush3.xpose.msk.msra.mxu1 %vm105_vm0, %v1558_v19 }
  0x11   :  { %1225 = vmatprep.subr.msk.mxu0 %vm105_vm0, %v1592_v25  ;;  %1277 = vmatprep.subr.msk.mxu1 %vm105_vm0, %v1592_v25 }
  0x12   :  { %10 = vsyncpa [#allocation3], 0  ;;  %v1621_v30 = vld [vmem:[%s2526_s0 + $0x50] sm:$0xff]  ;;  %v836_v31 = vsel %vm802_vm1, %v1609_v28, -inf  ;;  %v833_v32 = vsel %vm802_vm1, %v1614_v29, -inf  ;;  %v1636_v33 = vld [vmem:[%s2527_s1 + $0x68] sm:$0xff] }
  0x13   :  { %831 = vmax.xlane.f32.xlu1 %v830_v26  ;;  %828 = vmax.xlane.f32.xlu0 %v827_v27  ;;  %v1641_v34 = vld [vmem:[%s2527_s1 + $0x60] sm:$0xff]  ;;  %v1648_v35 = vld [vmem:[%s2526_s0 + $0x48] sm:$0xff]  ;;  %v842_v36 = vsel %vm802_vm1, %v1636_v33, -inf  ;;  %v1663_v38 = vld [vmem:[%s2527_s1 + $0x78] sm:$0xff]  ;;  %v89_v26 = vmul.f32 %v1587_v24, %v1587_v24  ;;  %s1432_s14 = smov [#allocation2]  }
  0x14   :  { %1226 = vmatpush3.xpose.msk.msra.mxu0 %vm105_vm0, %v1592_v25  ;;  %1293 = vmatpush3.xpose.msk.msra.mxu1 %vm105_vm0, %v1592_v25  ;;  %v839_v37 = vsel %vm802_vm1, %v1641_v34, -inf  ;;  %v1668_v39 = vld [vmem:[%s2527_s1 + $0x70] sm:$0xff]  ;;  %v848_v40 = vsel %vm802_vm1, %v1663_v38, -inf  ;;  %v1687_v42 = vld [vmem:[%s2526_s0 + $0x38] sm:$0xff]  ;;  %v1713_v44 = vld [vmem:[%s2526_s0 + $0x28] sm:$0xff]  ;;  %s1143_s15 = sshll.u32 %s1432_s14, 4  ;;  %s1144_s15 = int_to_ptr.vmem [resolvable:$true] %s1143_s15 }
  0x15   :  { %1227 = vmatprep.subr.msk.mxu0 %vm105_vm0, %v1621_v30  ;;  %1278 = vmatprep.subr.msk.mxu1 %vm105_vm0, %v1621_v30  ;;  %v845_v41 = vsel %vm802_vm1, %v1668_v39, -inf  ;;  %v1700_v43 = vld [vmem:[%s2526_s0 + $0x30] sm:$0xff]  ;;  %v1726_v45 = vld [vmem:[%s2526_s0 + $0x20] sm:$0xff]  ;;  %v72_v46 = vld [vmem:[%s2528_s2 + $0x8] sm:$0xff]  ;;  %v106_v27 = vsel %vm105_vm0, %v89_v26, 0.0  ;;  %s1409_s16 = scalar_lea.vmem %s1144_s15, 128  ;;  %p1414_p1 = scmp.lt.s32.totalorder %s1144_s15, %s1144_s15 }
  0x16   :  { %v1742_v47 = vld [vmem:[%s2526_s0 + $0x18] sm:$0xff]  ;;  %v73_v48 = vld [vmem:[%s2528_s2 + $0x10] sm:$0xff]  ;;  %v71_v49 = vld [vmem:[%s2528_s2] sm:$0xff]  ;;  %v93_v14 = vmul.f32 %v1726_v45, %v1726_v45  ;;  %v95_v20 = vmul.f32 %v1700_v43, %v1700_v43  ;;  %p1410_p0 = scmp.ne.s32.totalorder %s1144_s15, %s1409_s16  ;;  %p1415_p2 = scmp.lt.s32.totalorder %s1409_s16, %s1409_s16 }
  0x17   :  { %837 = vmax.xlane.f32.xlu1 %v836_v31  ;;  %834 = vmax.xlane.f32.xlu0 %v833_v32  ;;  %v41_v50 = vld [vmem:[%s2526_s0 + $0x10] sm:$0xff]  ;;  %v74_v51 = vld [vmem:[%s2528_s2 + $0x18] sm:$0xff]  ;;  %v40_v52 = vld [vmem:[%s2526_s0 + $0x8] sm:$0xff]  ;;  %v92_v31 = vmul.f32 %v1742_v47, %v1742_v47 }
  0x18   :  { %1228 = vmatpush3.xpose.msk.msra.mxu0 %vm105_vm0, %v1621_v30  ;;  %1294 = vmatpush3.xpose.msk.msra.mxu1 %vm105_vm0, %v1621_v30  ;;  %v80_v53 = vld [vmem:[%s2528_s2 + $0x48] sm:$0xff]  ;;  %v75_v54 = vld [vmem:[%s2528_s2 + $0x20] sm:$0xff]  ;;  %v82_v55 = vld [vmem:[%s2528_s2 + $0x58] sm:$0xff]  ;;  %v90_v4 = vmul.f32 %v40_v52, %v40_v52  ;;  %v91_v9 = vmul.f32 %v41_v50, %v41_v50  ;;  %v118_v15 = vsel %vm105_vm0, %v93_v14, 0.0  ;;  %v124_v21 = vsel %vm105_vm0, %v95_v20, 0.0  ;;  %p1416_p3 = por %p1415_p2, %p1414_p1 }
  0x19   :  { %1229 = vmatprep.subr.msk.mxu0 %vm105_vm0, %v1648_v35  ;;  %1279 = vmatprep.subr.msk.mxu1 %vm105_vm0, %v1648_v35  ;;  %v76_v56 = vld [vmem:[%s2528_s2 + $0x28] sm:$0xff]  ;;  %v77_v58 = vld [vmem:[%s2528_s2 + $0x30] sm:$0xff]  ;;  %v86_v59 = vld [vmem:[%s2528_s2 + $0x78] sm:$0xff]  ;;  %v115_v32 = vsel %vm105_vm0, %v92_v31, 0.0  ;;  %v102_v14 = vmul.f32 %v1526_v12, %v1526_v12 }
  0x1a   :  { %v84_v57 = vld [vmem:[%s2528_s2 + $0x68] sm:$0xff]  ;;  %v78_v60 = vld [vmem:[%s2528_s2 + $0x38] sm:$0xff]  ;;  %v79_v61 = vld [vmem:[%s2528_s2 + $0x40] sm:$0xff]  ;;  %v109_v8 = vsel %vm105_vm0, %v90_v4, 0.0  ;;  %v112_v13 = vsel %vm105_vm0, %v91_v9, 0.0  ;;  %p1417_p4 = pnand %p1416_p3, %p1410_p0 }
  0x1b   :  { %843 = vmax.xlane.f32.xlu1 %v842_v36  ;;  %840 = vmax.xlane.f32.xlu0 %v839_v37  ;;  %v81_v62 = vld [vmem:[%s2528_s2 + $0x50] sm:$0xff]  ;;  %v83_v63 = vld [vmem:[%s2528_s2 + $0x60] sm:$0xff]  ;;  %v94_v36 = vmul.f32 %v1713_v44, %v1713_v44 }
  0x1c   :  { %1230 = vmatpush3.xpose.msk.msra.mxu0 %vm105_vm0, %v1648_v35  ;;  %1295 = vmatpush3.xpose.msk.msra.mxu1 %vm105_vm0, %v1648_v35  ;;  %v85_v3 = vld [vmem:[%s2528_s2 + $0x70] sm:$0xff] }
  0x1d   :  { %1231 = vmatprep.subr.msk.mxu0 %vm105_vm0, %v1553_v18  ;;  %1280 = vmatprep.subr.msk.mxu1 %vm105_vm0, %v1553_v18  ;;  %v121_v37 = vsel %vm105_vm0, %v94_v36, 0.0 }
  0x1f   :  { %849 = vmax.xlane.f32.xlu1 %v848_v40  ;;  %846 = vmax.xlane.f32.xlu0 %v845_v41  ;;  %v96_v40 = vmul.f32 %v1687_v42, %v1687_v42 }
  0x20   :  { %1232 = vmatpush3.xpose.msk.msra.mxu0 %vm105_vm0, %v1553_v18  ;;  %1296 = vmatpush3.xpose.msk.msra.mxu1 %vm105_vm0, %v1553_v18 }
  0x21   :  { %1233 = vmatprep.subr.msk.mxu0 %vm105_vm0, %v1687_v42  ;;  %1281 = vmatprep.subr.msk.mxu1 %vm105_vm0, %v1687_v42  ;;  %v127_v41 = vsel %vm105_vm0, %v96_v40, 0.0 }
  0x24   :  { %1234 = vmatpush3.xpose.msk.msra.mxu0 %vm105_vm0, %v1687_v42  ;;  %1297 = vmatpush3.xpose.msk.msra.mxu1 %vm105_vm0, %v1687_v42 }
  0x25   :  { %1235 = vmatprep.subr.msk.mxu0 %vm105_vm0, %v1700_v43  ;;  %1282 = vmatprep.subr.msk.mxu1 %vm105_vm0, %v1700_v43 }
  0x28   :  { %1236 = vmatpush3.xpose.msk.msra.mxu0 %vm105_vm0, %v1700_v43  ;;  %1298 = vmatpush3.xpose.msk.msra.mxu1 %vm105_vm0, %v1700_v43 }
  0x29   :  { %1237 = vmatprep.subr.msk.mxu0 %vm105_vm0, %v1713_v44  ;;  %1283 = vmatprep.subr.msk.mxu1 %vm105_vm0, %v1713_v44 }
  0x2c   :  { %1238 = vmatpush3.xpose.msk.msra.mxu0 %vm105_vm0, %v1713_v44  ;;  %1299 = vmatpush3.xpose.msk.msra.mxu1 %vm105_vm0, %v1713_v44 }
  0x2d   :  { %1239 = vmatprep.subr.msk.mxu0 %vm105_vm0, %v1726_v45  ;;  %1284 = vmatprep.subr.msk.mxu1 %vm105_vm0, %v1726_v45 }
  0x30   :  { %1240 = vmatpush3.xpose.msk.msra.mxu0 %vm105_vm0, %v1726_v45  ;;  %681 = vperm.xlu1 %1312, %v72_v46  }
  0x31   :  { %1241 = vmatprep.subr.msk.mxu0 %vm105_vm0, %v1742_v47  ;;  %1300 = vmatpush3.xpose.msk.msra.mxu1 %vm105_vm0, %v1726_v45 }
  0x32   :  { %1285 = vmatprep.subr.msk.mxu1 %vm105_vm0, %v1742_v47 }
  0x34   :  { %1242 = vmatpush3.xpose.msk.msra.mxu0 %vm105_vm0, %v1742_v47  ;;  %684 = vperm.xlu1 %1312, %v73_v48   ;;  %v99_v48 = vmul.f32 %v1621_v30, %v1621_v30 }
  0x35   :  { %678 = vperm.xlu0 %1311, %v71_v49   ;;  %1243 = vmatprep.subr.msk.mxu0 %vm105_vm0, %v41_v50 }
  0x36   :  { %1301 = vmatpush3.xpose.msk.msra.mxu1 %vm105_vm0, %v1742_v47 }
  0x37   :  { %1286 = vmatprep.subr.msk.mxu1 %vm105_vm0, %v41_v50 }
  0x38   :  { %1244 = vmatpush3.xpose.msk.msra.mxu0 %vm105_vm0, %v41_v50  ;;  %687 = vperm.xlu1 %1312, %v74_v51  }
  0x39   :  { %1245 = vmatprep.subr.msk.mxu0 %vm105_vm0, %v40_v52  ;;  %705 = vperm.xlu0 %1311, %v80_v53   ;;  %v136_v53 = vsel %vm105_vm0, %v99_v48, 0.0 }
  0x3a   :  { %1302 = vmatpush3.xpose.msk.msra.mxu1 %vm105_vm0, %v41_v50 }
  0x3b   :  { %1287 = vmatprep.subr.msk.mxu1 %vm105_vm0, %v40_v52 }
  0x3c   :  { %1246 = vmatpush3.xpose.msk.msra.mxu0 %vm105_vm0, %v40_v52  ;;  %690 = vperm.xlu1 %1312, %v75_v54   ;;  %v100_v54 = vmul.f32 %v1592_v25, %v1592_v25 }
  0x3d   :  { %1247 = vmatprep.subr.msk.mxu0 %vm105_vm0, %v1587_v24  ;;  %711 = vperm.xlu0 %1311, %v82_v55  }
  0x3e   :  { %1303 = vmatpush3.xpose.msk.msra.mxu1 %vm105_vm0, %v40_v52 }
  0x3f   :  { %1288 = vmatprep.subr.msk.mxu1 %vm105_vm0, %v1587_v24 }
  0x40   :  { %1248 = vmatpush3.xpose.msk.msra.mxu0 %vm105_vm0, %v1587_v24  ;;  %693 = vperm.xlu1 %1312, %v76_v56  }
  0x41   :  { %717 = vperm.xlu0 %1311, %v84_v57  }
  0x42   :  { %1304 = vmatpush3.xpose.msk.msra.mxu1 %vm105_vm0, %v1587_v24  ;;  %v97_v24 = vmul.f32 %v1553_v18, %v1553_v18 }
  0x43   :  { %1250 = vmatmul.mubr.msk.f32.vlgmr.msra.gmra.mxu0 %vm105_vm0, %v40_v52 }
  0x44   :  { %696 = vperm.xlu1 %1312, %v77_v58   ;;  %1252 = vmatprep.mubr.msk.f32.mxu0 %vm105_vm0, %v41_v50  ;;  %v139_v58 = vsel %vm105_vm0, %v100_v54, 0.0 }
  0x45   :  { %723 = vperm.xlu0 %1311, %v86_v59   ;;  %1262 = vmatmul.mubr.msk.f32.vlgmr.msra.gmra.mxu1 %vm105_vm0, %v1648_v35  ;;  %v101_v59 = vmul.f32 %v1558_v19, %v1558_v19 }
  0x46   :  { %1264 = vmatprep.mubr.msk.f32.mxu1 %vm105_vm0, %v1621_v30 }
  0x47   :  { %1253 = vmatmul.mubr.msk.f32.gmra.mxu0 %vm105_vm0, %v1742_v47 }
  0x48   :  { %699 = vperm.xlu1 %1312, %v78_v60   ;;  %1255 = vmatprep.mubr.msk.f32.mxu0 %vm105_vm0, %v1726_v45  ;;  %v98_v45 = vmul.f32 %v1648_v35, %v1648_v35 }
  0x49   :  { %1265 = vmatmul.mubr.msk.f32.gmra.mxu1 %vm105_vm0, %v1592_v25 }
  0x4a   :  { %1267 = vmatprep.mubr.msk.f32.mxu1 %vm105_vm0, %v1558_v19  ;;  %v133_v18 = vsel %vm105_vm0, %v98_v45, 0.0 }
  0x4b   :  { %1256 = vmatmul.mubr.msk.f32.gmra.mxu0 %vm105_vm0, %v1713_v44 }
  0x4c   :  { %702 = vperm.xlu1 %1312, %v79_v61   ;;  %1258 = vmatprep.mubr.msk.f32.mxu0 %vm105_vm0, %v1700_v43  ;;  %v130_v43 = vsel %vm105_vm0, %v97_v24, 0.0 }
  0x4d   :  { %1268 = vmatmul.mubr.msk.f32.gmra.mxu1 %vm105_vm0, %v1526_v12  ;;  %v103_v12 = vmul.f32 %v1487_v5, %v1487_v5 }
  0x4e   :  { %1270 = vmatprep.mubr.msk.f32.mxu1 %vm105_vm0, %v1487_v5 }
  0x4f   :  { %1259 = vmatmul.mubr.msk.f32.gmra.mxu0 %vm105_vm0, %v1687_v42 }
  0x50   :  { %708 = vperm.xlu1 %1312, %v81_v62  }
  0x51   :  { %1271 = vmatmul.mubr.msk.f32.gmra.mxu1 %vm105_vm0, %v1466_v0 }
  0x54   :  { %714 = vperm.xlu1 %1312, %v83_v63   ;;  %v142_v63 = vsel %vm105_vm0, %v101_v59, 0.0 }
  0x58   :  { %720 = vperm.xlu1 %1312, %v85_v3  }
  0x64   :  { %110 = vadd.xlane.f32.xlu0 %v109_v8 }
  0x68   :  { %113 = vadd.xlane.f32.xlu0 %v112_v13 }
  0x6c   :  { %119 = vadd.xlane.f32.xlu0 %v118_v15 }
  0x70   :  { %125 = vadd.xlane.f32.xlu0 %v124_v21 }
  0x7c   :  { %107 = vadd.xlane.f32.xlu1 %v106_v27 }
  0x80   :  { %116 = vadd.xlane.f32.xlu1 %v115_v32 }
  0x84   :  { %122 = vadd.xlane.f32.xlu1 %v121_v37  ;;  %v145_v37 = vsel %vm105_vm0, %v102_v14, 0.0 }
  0x88   :  { %128 = vadd.xlane.f32.xlu1 %v127_v41 }
  0x8c   :  { %v1874_v46 = vpop.xlane.xlu1 %810  ;;  %v1876_v44 = vpop.xlane.xlu0 %804  ;;  %131 = vadd.xlane.f32.xlu1 %v130_v43 }
  0x8d   :  { %v853_v42 = vsub.f32 %v1471_v1, %v1874_v46  ;;  %v851_v47 = vsub.f32 %v1476_v2, %v1876_v44 }
  0x8f   :  { %v867_v49 = vmul.f32 1.442695, %v851_v47  ;;  %v871_v51 = vmul.f32 1.442695, %v853_v42  ;;  %v104_v42 = vmul.f32 %v1466_v0, %v1466_v0 }
  0x90   :  { %v1885_v50 = vpop.xlane.xlu1 %813  ;;  %v1887_v35 = vpop.xlane.xlu0 %807  ;;  %134 = vadd.xlane.f32.xlu1 %v133_v18 }
  0x91   :  { %v852_v52 = vsub.f32 %v1497_v7, %v1887_v35  ;;  %1313 = vpow2.f32 %v867_v49  ;;  %v854_v55 = vsub.f32 %v1492_v6, %v1885_v50 }
  0x92   :  { %1315 = vpow2.f32 %v871_v51  ;;  %v148_v51 = vsel %vm105_vm0, %v103_v12, 0.0 }
  0x93   :  { %v869_v30 = vmul.f32 1.442695, %v852_v52  ;;  %v873_v60 = vmul.f32 1.442695, %v854_v55  ;;  %v151_v55 = vsel %vm105_vm0, %v104_v42, 0.0 }
  0x94   :  { %v1896_v56 = vpop.xlane.xlu1 %819  ;;  %137 = vadd.xlane.f32.xlu1 %v136_v53  ;;  %v1898_v57 = vpop.xlane.xlu0 %816 }
  0x95   :  { %2544 = vst [vmem:[#allocation5_spill] sm:$0xff] %v1896_v56  ;;  %2545 = vst [vmem:[#allocation6_spill] sm:$0xff] %v1898_v57  ;;  %1317 = vpow2.f32 %v869_v30  ;;  %v855_v25 = vsub.f32 %v1519_v11, %v1898_v57  ;;  %v856_v3 = vsub.f32 %v1514_v10, %v1896_v56 }
  0x96   :  { %1319 = vpow2.f32 %v873_v60 }
  0x97   :  { %v875_v4 = vmul.f32 1.442695, %v855_v25  ;;  %v877_v9 = vmul.f32 1.442695, %v856_v3 }
  0x98   :  { %v1905_v61 = vpop.xlane.xlu1 %825  ;;  %140 = vadd.xlane.f32.xlu1 %v139_v58  ;;  %v1907_v62 = vpop.xlane.xlu0 %822  ;;  %v465_v58 = vlaneseq }
  0x99   :  { %2546 = vst [vmem:[#allocation7_spill] sm:$0xff] %v1905_v61  ;;  %2547 = vst [vmem:[#allocation8_spill] sm:$0xff] %v1907_v62  ;;  %1321 = vpow2.f32 %v875_v4  ;;  %v857_v13 = vsub.f32 %v1546_v17, %v1907_v62  ;;  %v858_v27 = vsub.f32 %v1541_v16, %v1905_v61 }
  0x9a   :  { %1323 = vpow2.f32 %v877_v9 }
  0x9b   :  { %v879_v36 = vmul.f32 1.442695, %v857_v13  ;;  %v881_v47 = vmul.f32 1.442695, %v858_v27  ;;  %v1962_v13 = vand.u32 127, %v465_v58 }
  0x9c   :  { %v1912_v8 = vpop.xlane.xlu1 %831  ;;  %143 = vadd.xlane.f32.xlu1 %v142_v63  ;;  %v1914_v19 = vpop.xlane.xlu0 %828 }
  0x9d   :  { %2548 = vst [vmem:[#allocation9_spill] sm:$0xff] %v1912_v8  ;;  %2549 = vst [vmem:[#allocation10_spill] sm:$0xff] %v1914_v19  ;;  %v859_v48 = vsub.f32 %v1580_v23, %v1914_v19  ;;  %v860_v60 = vsub.f32 %v1575_v22, %v1912_v8 }
  0x9e   :  { %v1314_v15 = vpop.eup %1313 }
  0x9f   :  { %v899_v21 = vsel %vm802_vm1, %v1314_v15, 0.0  ;;  %v1316_v32 = vpop.eup %1315  ;;  %v883_v25 = vmul.f32 1.442695, %v859_v48  ;;  %v885_v15 = vmul.f32 1.442695, %v860_v60 }
  0xa0   :  { %v1920_v20 = vpop.xlane.xlu1 %837  ;;  %v1923_v26 = vpop.xlane.xlu0 %834  ;;  %900 = vadd.xlane.f32.xlu1 %v899_v21  ;;  %v905_v49 = vsel %vm802_vm1, %v1316_v32, 0.0 }
  0xa1   :  { %2550 = vst [vmem:[#allocation11_spill] sm:$0xff] %v1920_v20  ;;  %2551 = vst [vmem:[#allocation12_spill] sm:$0xff] %v1923_v26  ;;  %v862_v31 = vsub.f32 %v1609_v28, %v1920_v20  ;;  %v861_v21 = vsub.f32 %v1614_v29, %v1923_v26 }
  0xa2   :  { %v1318_v40 = vpop.eup %1317 }
  0xa3   :  { %v889_v24 = vmul.f32 1.442695, %v862_v31  ;;  %v902_v43 = vsel %vm802_vm1, %v1318_v40, 0.0  ;;  %v1320_v52 = vpop.eup %1319  ;;  %v887_v40 = vmul.f32 1.442695, %v861_v21 }
  0xa4   :  { %v1932_v41 = vpop.xlane.xlu1 %843  ;;  %v1935_v45 = vpop.xlane.xlu0 %840  ;;  %903 = vadd.xlane.f32.xlu0 %v902_v43  ;;  %146 = vadd.xlane.f32.xlu1 %v145_v37  ;;  %v908_v63 = vsel %vm802_vm1, %v1320_v52, 0.0 }
  0xa5   :  { %2552 = vst [vmem:[#allocation13_spill] sm:$0xff] %v1932_v41  ;;  %2553 = vst [vmem:[#allocation14_spill] sm:$0xff] %v1935_v45  ;;  %1325 = vpow2.f32 %v889_v24  ;;  %v864_v18 = vsub.f32 %v1636_v33, %v1932_v41  ;;  %v863_v5 = vsub.f32 %v1641_v34, %v1935_v45 }
  0xa6   :  { %1327 = vpow2.f32 %v879_v36  ;;  %v1322_v3 = vpop.eup %1321 }
  0xa7   :  { %v891_v0 = vmul.f32 1.442695, %v863_v5  ;;  %1329 = vpow2.f32 %v881_v47  ;;  %v893_v30 = vmul.f32 1.442695, %v864_v18  ;;  %v911_v27 = vsel %vm802_vm1, %v1322_v3, 0.0  ;;  %v1324_v31 = vpop.eup %1323 }
  0xa8   :  { %v1947_v53 = vpop.xlane.xlu1 %849  ;;  %v1949_v54 = vpop.xlane.xlu0 %846  ;;  %906 = vadd.xlane.f32.xlu0 %v905_v49  ;;  %149 = vadd.xlane.f32.xlu1 %v148_v51  ;;  %v914_v24 = vsel %vm802_vm1, %v1324_v31, 0.0 }
  0xa9   :  { %2554 = vst [vmem:[#allocation15_spill] sm:$0xff] %v1947_v53  ;;  %2555 = vst [vmem:[#allocation16_spill] sm:$0xff] %v1949_v54  ;;  %v865_v59 = vsub.f32 %v1668_v39, %v1949_v54  ;;  %1331 = vpow2.f32 %v891_v0  ;;  %v866_v9 = vsub.f32 %v1663_v38, %v1947_v53 }
  0xaa   :  { %1333 = vpow2.f32 %v893_v30 }
  0xab   :  { %v895_v14 = vmul.f32 1.442695, %v865_v59  ;;  %1335 = vpow2.f32 %v883_v25  ;;  %v897_v37 = vmul.f32 1.442695, %v866_v9 }
  0xac   :  { %v1957_v4 = vpop.permute.xlu1 %681  ;;  %909 = vadd.xlane.f32.xlu0 %v908_v63  ;;  %152 = vadd.xlane.f32.xlu1 %v151_v55 }
  0xad   :  { %1337 = vpow2.f32 %v895_v14  ;;  %vm996_vm4 = vcmp.eq.s32.totalorder %v1962_v13, %v1957_v4 }
  0xae   :  { %1339 = vpow2.f32 %v885_v15 }
  0xaf   :  { %1341 = vpow2.f32 %v897_v37 }
  0xb0   :  { %v1967_v32 = vpop.permute.xlu1 %684  ;;  %v1969_v36 = vpop.permute.xlu0 %678  ;;  %912 = vadd.xlane.f32.xlu0 %v911_v27  ;;  %1343 = vpow2.f32 %v887_v40 }
  0xb1   :  { %vm995_vm2 = vcmp.eq.s32.totalorder %v1962_v13, %v1969_v36  ;;  %vm997_vm6 = vcmp.eq.s32.totalorder %v1962_v13, %v1967_v32 }
  0xb2   :  { %v1326_v12 = vpop.eup %1325  ;;  %v1011_v43 = vsel %vm995_vm2, %v1476_v2, 0.0 }
  0xb3   :  { %v1328_v42 = vpop.eup %1327  ;;  %v1027_v47 = vsel %vm802_vm1, %v1011_v43, 0.0  ;;  %v932_v5 = vsel %vm802_vm1, %v1326_v12, 0.0 }
  0xb4   :  { %v1976_v18 = vpop.permute.xlu1 %687  ;;  %1028 = vadd.xlane.f32.xlu1 %v1027_v47  ;;  %915 = vadd.xlane.f32.xlu0 %v914_v24  ;;  %v1330_v48 = vpop.eup %1329  ;;  %v917_v49 = vsel %vm802_vm1, %v1328_v42, 0.0  ;;  %v1012_v42 = vsel %vm996_vm4, %v1497_v7, 0.0 }
  0xb5   :  { %v920_v55 = vsel %vm802_vm1, %v1330_v48, 0.0  ;;  %v1988_v9 = vpop.permute.xlu0 %705  ;;  %v1030_v48 = vsel %vm802_vm1, %v1012_v42, 0.0  ;;  %vm998_vm8 = vcmp.eq.s32.totalorder %v1962_v13, %v1976_v18 }
  0xb6   :  { %v1332_v51 = vpop.eup %1331  ;;  %vm1004_vm5 = vcmp.eq.s32.totalorder %v1962_v13, %v1988_v9 }
  0xb7   :  { %v935_v2 = vsel %vm802_vm1, %v1332_v51, 0.0  ;;  %v1334_v0 = vpop.eup %1333 }
  0xb8   :  { %v1980_v52 = vpop.permute.xlu1 %690  ;;  %933 = vadd.xlane.f32.xlu1 %v932_v5  ;;  %918 = vadd.xlane.f32.xlu0 %v917_v49  ;;  %v1336_v30 = vpop.eup %1335  ;;  %v938_v60 = vsel %vm802_vm1, %v1334_v0, 0.0  ;;  %v1020_v49 = vsel %vm1004_vm5, %v1575_v22, 0.0  ;;  %v1014_v22 = vsel %vm998_vm8, %v1492_v6, 0.0 }
  0xb9   :  { %v923_v63 = vsel %vm802_vm1, %v1336_v30, 0.0  ;;  %v2001_v40 = vpop.permute.xlu0 %711  ;;  %v1054_v7 = vsel %vm802_vm1, %v1020_v49, 0.0  ;;  %vm999_vm10 = vcmp.eq.s32.totalorder %v1962_v13, %v1980_v52  ;;  %v2078_v49 = vshrl.u32 %v465_v58, 7 }
  0xba   :  { %v1338_v25 = vpop.eup %1337  ;;  %vm1006_vm7 = vcmp.eq.s32.totalorder %v1962_v13, %v2001_v40  ;;  %v1015_v6 = vsel %vm999_vm10, %v1519_v11, 0.0 }
  0xbb   :  { %v1340_v3 = vpop.eup %1339  ;;  %v941_v15 = vsel %vm802_vm1, %v1338_v25, 0.0  ;;  %v1039_v25 = vsel %vm802_vm1, %v1015_v6, 0.0 }
  0xbc   :  { %v1984_v59 = vpop.permute.xlu1 %693  ;;  %936 = vadd.xlane.f32.xlu1 %v935_v2  ;;  %921 = vadd.xlane.f32.xlu0 %v920_v55  ;;  %v1342_v21 = vpop.eup %1341  ;;  %v926_v27 = vsel %vm802_vm1, %v1340_v3, 0.0  ;;  %v1022_v2 = vsel %vm1006_vm7, %v1609_v28, 0.0  ;;  %v1036_v55 = vsel %vm802_vm1, %v1014_v22, 0.0 }
  0xbd   :  { %v1344_v31 = vpop.eup %1343  ;;  %v944_v12 = vsel %vm802_vm1, %v1342_v21, 0.0  ;;  %v2011_v5 = vpop.permute.xlu0 %717  ;;  %v1060_v0 = vsel %vm802_vm1, %v1022_v2, 0.0  ;;  %vm1000_vm12 = vcmp.eq.s32.totalorder %v1962_v13, %v1984_v59 }
  0xbe   :  { %v929_v24 = vsel %vm802_vm1, %v1344_v31, 0.0  ;;  %vm1008_vm9 = vcmp.eq.s32.totalorder %v1962_v13, %v2011_v5 }
  0xbf   :  { %v1024_v30 = vsel %vm1008_vm9, %v1636_v33, 0.0  ;;  %v1016_v33 = vsel %vm1000_vm12, %v1514_v10, 0.0 }
  0xc0   :  { %v1990_v14 = vpop.permute.xlu1 %696  ;;  %939 = vadd.xlane.f32.xlu1 %v938_v60  ;;  %924 = vadd.xlane.f32.xlu0 %v923_v63  ;;  %v1066_v60 = vsel %vm802_vm1, %v1024_v30, 0.0 }
  0xc1   :  { %vm1001_vm13 = vcmp.eq.s32.totalorder %v1962_v13, %v1990_v14 }
  0xc2   :  { %v1017_v21 = vsel %vm1001_vm13, %v1546_v17, 0.0 }
  0xc4   :  { %v1994_v37 = vpop.permute.xlu1 %699  ;;  %942 = vadd.xlane.f32.xlu1 %v941_v15  ;;  %927 = vadd.xlane.f32.xlu0 %v926_v27  ;;  %v1042_v15 = vsel %vm802_vm1, %v1016_v33, 0.0 }
  0xc5   :  { %vm1002_vm3 = vcmp.eq.s32.totalorder %v1962_v13, %v1994_v37 }
  0xc6   :  { %v1018_v43 = vsel %vm1002_vm3, %v1541_v16, 0.0  ;;  %v1013_v16 = vsel %vm997_vm6, %v1471_v1, 0.0  ;;  %v2028_v1 = vpop.permute.xlu0 %723  ;;  %vm501_vm3 = vcmp.eq.s32.totalorder %v1962_v13, %v2078_v49 }
  0xc7   :  { %v1048_v47 = vsel %vm802_vm1, %v1018_v43, 0.0  ;;  %v1033_v51 = vsel %vm802_vm1, %v1013_v16, 0.0  ;;  %vm1010_vm11 = vcmp.eq.s32.totalorder %v1962_v13, %v2028_v1 }
  0xc8   :  { %945 = vadd.xlane.f32.xlu1 %v944_v12  ;;  %930 = vadd.xlane.f32.xlu0 %v929_v24  ;;  %v2035_v28 = vpop.permute.xlu1 %702  ;;  %v1026_v63 = vsel %vm1010_vm11, %v1663_v38, 0.0  ;;  %v1045_v38 = vsel %vm802_vm1, %v1017_v21, 0.0 }
  0xc9   :  { %v1072_v11 = vsel %vm802_vm1, %v1026_v63, 0.0  ;;  %vm1003_vm14 = vcmp.eq.s32.totalorder %v1962_v13, %v2035_v28 }
  0xca   :  { %v1019_v10 = vsel %vm1003_vm14, %v1580_v23, 0.0 }
  0xcb   :  { %v1051_v31 = vsel %vm802_vm1, %v1019_v10, 0.0 }
  0xcc   :  { %1049 = vadd.xlane.f32.xlu1 %v1048_v47  ;;  %1031 = vadd.xlane.f32.xlu0 %v1030_v48  ;;  %v2046_v3 = vpop.permute.xlu1 %708  ;;  %v2075_v48 = vld [vmem:[%s2530_s4] ss:$0 sm:$0xff] }
  0xcd   :  { %vm1005_vm15 = vcmp.eq.s32.totalorder %v1962_v13, %v2046_v3 }
  0xce   :  { %v1021_v12 = vsel %vm1005_vm15, %v1614_v29, 0.0 }
  0xcf   :  { %v1057_v24 = vsel %vm802_vm1, %v1021_v12, 0.0  ;;  %v471_v12 = vadd.s32 40, %v2078_v49 }
  0xd0   :  { %1055 = vadd.xlane.f32.xlu1 %v1054_v7  ;;  %1034 = vadd.xlane.f32.xlu0 %v1033_v51  ;;  %v2054_v27 = vpop.permute.xlu1 %714  ;;  %v467_v51 = vadd.s32 8, %v2078_v49 }
  0xd1   :  { %vm1007_vm0 = vcmp.eq.s32.totalorder %v1962_v13, %v2054_v27  ;;  %vm506_vm7 = vcmp.eq.s32.totalorder %v1962_v13, %v471_v12 }
  0xd2   :  { %v1023_v43 = vsel %vm1007_vm0, %v1641_v34, 0.0 }
  0xd3   :  { %v1063_v23 = vsel %vm802_vm1, %v1023_v43, 0.0 }
  0xd4   :  { %1061 = vadd.xlane.f32.xlu1 %v1060_v0  ;;  %1037 = vadd.xlane.f32.xlu0 %v1036_v55  ;;  %v2063_v17 = vpop.permute.xlu1 %720  ;;  %v468_v0 = vadd.s32 16, %v2078_v49 }
  0xd5   :  { %vm1009_vm2 = vcmp.eq.s32.totalorder %v1962_v13, %v2063_v17 }
  0xd6   :  { %v1025_v42 = vsel %vm1009_vm2, %v1668_v39, 0.0  ;;  %vm503_vm4 = vcmp.eq.s32.totalorder %v1962_v13, %v468_v0  ;;  %v2140_v0 = vadd.s32 96, %v2078_v49 }
  0xd7   :  { %v1069_v29 = vsel %vm802_vm1, %v1025_v42, 0.0  ;;  %vm502_vm1 = vcmp.eq.s32.totalorder %v1962_v13, %v467_v51 }
  0xd8   :  { %1067 = vadd.xlane.f32.xlu1 %v1066_v60  ;;  %1040 = vadd.xlane.f32.xlu0 %v1039_v25  ;;  %v469_v25 = vadd.s32 24, %v2078_v49 }
  0xda   :  { %vm504_vm5 = vcmp.eq.s32.totalorder %v1962_v13, %v469_v25 }
  0xdc   :  { %1073 = vadd.xlane.f32.xlu1 %v1072_v11  ;;  %1043 = vadd.xlane.f32.xlu0 %v1042_v15 }
  0xe0   :  { %1046 = vadd.xlane.f32.xlu0 %v1045_v38 }
  0xe4   :  { %1052 = vadd.xlane.f32.xlu0 %v1051_v31  ;;  %v470_v31 = vadd.s32 32, %v2078_v49 }
  0xe6   :  { %vm505_vm6 = vcmp.eq.s32.totalorder %v1962_v13, %v470_v31 }
  0xe8   :  { %1058 = vadd.xlane.f32.xlu0 %v1057_v24 }
  0xec   :  { %1064 = vadd.xlane.f32.xlu0 %v1063_v23 }
  0xed   :  { %v111_v47 = vpop.xlane.xlu0 %110 }
  0xee   :  { %v402_v34 = vadd.f32 %v2075_v48, %v111_v47 }
  0xf0   :  { %1070 = vadd.xlane.f32.xlu0 %v1069_v29 }
  0xf1   :  { %v114_v16 = vpop.xlane.xlu0 %113 }
  0xf2   :  { %v403_v15 = vadd.f32 %v2075_v48, %v114_v16  ;;  %v2099_v16 = vadd.s32 48, %v2078_v49 }
  0xf4   :  { %vm507_vm8 = vcmp.eq.s32.totalorder %v1962_v13, %v2099_v16 }
  0xf5   :  { %v120_v21 = vpop.xlane.xlu0 %119 }
 0x103   :  { %v1251_v7 = vpop.f32.mrf.mxu0 }
 0x104   :  { %v418_v2 = vmul.f32 2.0, %v1251_v7 }
 0x105   :  { %v316_v39 = vpop.f32.mrf.mxu0  ;;  %v108_v22 = vpop.xlane.xlu1 %107 }
 0x106   :  { %v434_v55 = vsub.f32 %v402_v34, %v418_v2  ;;  %v417_v30 = vmul.f32 2.0, %v316_v39  ;;  %v401_v6 = vadd.f32 %v2075_v48, %v108_v22  ;;  %v1263_v60 = vpop.f32.mrf.mxu1  ;;  %v405_v34 = vadd.f32 %v2075_v48, %v120_v21 }
 0x107   :  { %v1254_v58 = vpop.f32.mrf.mxu0  ;;  %v2146_v25 = vmul.f32 2.0, %v1263_v60 }
 0x108   :  { %v450_v63 = vmax.f32 %v434_v55, 0.0  ;;  %v433_v33 = vsub.f32 %v401_v6, %v417_v30  ;;  %v420_v11 = vmul.f32 2.0, %v1254_v58  ;;  %v356_v29 = vpop.f32.mrf.mxu1  ;;  %v2110_v6 = vadd.s32 56, %v2078_v49 }
 0x109   :  { %v326_v38 = vpop.f32.mrf.mxu0  ;;  %v117_v10 = vpop.xlane.xlu1 %116 }
 0x10a   :  { %v2092_v24 = vsel %vm502_vm1, 0.0, %v450_v63  ;;  %v449_v43 = vmax.f32 %v433_v33, 0.0  ;;  %v419_v23 = vmul.f32 2.0, %v326_v38  ;;  %v404_v42 = vadd.f32 %v2075_v48, %v117_v10  ;;  %v1266_v22 = vpop.f32.mrf.mxu1 }
 0x10b   :  { %1345 = vrsqrt.f32 %v2092_v24  ;;  %v1257_v47 = vpop.f32.mrf.mxu0  ;;  %v2116_v38 = vadd.s32 64, %v2078_v49  ;;  %v2119_v10 = vadd.s32 72, %v2078_v49  ;;  %vm508_vm9 = vcmp.eq.s32.totalorder %v1962_v13, %v2110_v6 }
 0x10c   :  { %v2104_v7 = vsel %vm501_vm3, 0.0, %v449_v43  ;;  %v435_v51 = vsub.f32 %v403_v15, %v419_v23  ;;  %v436_v2 = vsub.f32 %v404_v42, %v420_v11  ;;  %v422_v39 = vmul.f32 2.0, %v1257_v47  ;;  %v126_v15 = vpop.xlane.xlu0 %125 }
 0x10d   :  { %1347 = vrsqrt.f32 %v2104_v7  ;;  %v336_v55 = vpop.f32.mrf.mxu0  ;;  %v123_v30 = vpop.xlane.xlu1 %122  ;;  %v2122_v43 = vadd.s32 80, %v2078_v49  ;;  %v2125_v23 = vadd.s32 88, %v2078_v49  ;;  %vm542_vm10 = vcmp.eq.f32.partialorder %v2092_v24, inf }
 0x10e   :  { %v451_v58 = vmax.f32 %v435_v51, 0.0  ;;  %v452_v63 = vmax.f32 %v436_v2, 0.0  ;;  %v421_v33 = vmul.f32 2.0, %v336_v55  ;;  %v406_v21 = vadd.f32 %v2075_v48, %v123_v30  ;;  %v366_v55 = vpop.f32.mrf.mxu1 }
 0x10f   :  { %v1260_v11 = vpop.f32.mrf.mxu0  ;;  %v407_v30 = vadd.f32 %v2075_v48, %v126_v15  ;;  %vm544_vm11 = vcmp.eq.f32.partialorder %v2092_v24, 0.0  ;;  %v545_v41 = vand.u32 2147483648, %v2092_v24  ;;  %vm535_vm12 = vcmp.eq.f32.partialorder %v2104_v7, inf }
 0x110   :  { %v2129_v42 = vsel %vm503_vm4, 0.0, %v451_v58  ;;  %v2133_v47 = vsel %vm504_vm5, 0.0, %v452_v63  ;;  %v437_v51 = vsub.f32 %v405_v34, %v421_v33  ;;  %v438_v2 = vsub.f32 %v406_v21, %v422_v39  ;;  %v2152_v15 = vpop.f32.mrf.mxu1 }
 0x111   :  { %1349 = vrsqrt.f32 %v2129_v42  ;;  %v346_v54 = vpop.f32.mrf.mxu0  ;;  %v129_v53 = vpop.xlane.xlu1 %128  ;;  %v2143_v58 = vadd.s32 104, %v2078_v49  ;;  %v425_v34 = vmul.f32 2.0, %v356_v29  ;;  %v2149_v39 = vadd.s32 112, %v2078_v49 }
 0x112   :  { %1351 = vrsqrt.f32 %v2133_v47  ;;  %v453_v63 = vmax.f32 %v437_v51, 0.0  ;;  %v454_v33 = vmax.f32 %v438_v2, 0.0  ;;  %v423_v21 = vmul.f32 2.0, %v346_v54  ;;  %v376_v12 = vpop.f32.mrf.mxu1 }
 0x113   :  { %v424_v45 = vmul.f32 2.0, %v1260_v11  ;;  %v408_v26 = vadd.f32 %v2075_v48, %v129_v53  ;;  %vm509_vm13 = vcmp.eq.s32.totalorder %v1962_v13, %v2116_v38  ;;  %vm537_vm14 = vcmp.eq.f32.partialorder %v2104_v7, 0.0 }
 0x114   :  { %v2160_v60 = vsel %vm505_vm6, 0.0, %v453_v63  ;;  %v2164_v29 = vsel %vm506_vm7, 0.0, %v454_v33  ;;  %v439_v54 = vsub.f32 %v407_v30, %v423_v21  ;;  %v538_v11 = vand.u32 2147483648, %v2104_v7  ;;  %v2181_v30 = vld [vmem:[%s2529_s3] ss:$0 sm:$0xff] }
 0x115   :  { %v132_v51 = vpop.xlane.xlu1 %131  ;;  %1353 = vrsqrt.f32 %v2160_v60  ;;  %v2171_v53 = vmul.f32 2.0, %v1266_v22  ;;  %vm549_vm15 = vcmp.eq.f32.partialorder %v2129_v42, inf  ;;  %vm551_vm0 = vcmp.eq.f32.partialorder %v2129_v42, 0.0 }
 0x116   :  { %1355 = vrsqrt.f32 %v2164_v29  ;;  %v2176_v31 = vmul.f32 2.0, %v366_v55  ;;  %v552_v63 = vand.u32 2147483648, %v2129_v42  ;;  %v455_v33 = vmax.f32 %v439_v54, 0.0 }
 0x117   :  { %v440_v22 = vsub.f32 %v408_v26, %v424_v45  ;;  %v409_v21 = vadd.f32 %v2075_v48, %v132_v51  ;;  %vm556_vm2 = vcmp.eq.f32.partialorder %v2133_v47, inf  ;;  %vm558_vm1 = vcmp.eq.f32.partialorder %v2133_v47, 0.0 }
 0x118   :  { %v1346_v2 = vpop.eup %1345  ;;  %v559_v55 = vand.u32 2147483648, %v2133_v47  ;;  %v2192_v62 = vsel %vm507_vm8, 0.0, %v455_v33  ;;  %v2194_v26 = vmul.f32 2.0, %v376_v12  ;;  %vm730_vm3 = vcmp.eq.s32.totalorder %v1957_v4, %v2181_v30 }
 0x119   :  { %v541_v20 = vmul.f32 %v1346_v2, %v2092_v24  ;;  %v135_v19 = vpop.xlane.xlu1 %134  ;;  %v456_v61 = vmax.f32 %v440_v22, 0.0  ;;  %v441_v54 = vsub.f32 %v409_v21, %v425_v34  ;;  %vm563_vm4 = vcmp.eq.f32.partialorder %v2160_v60, inf }
 0x11a   :  { %v1348_v8 = vpop.eup %1347  ;;  %1357 = vrsqrt.f32 %v2192_v62  ;;  %vm510_vm5 = vcmp.eq.s32.totalorder %v1962_v13, %v2119_v10  ;;  %vm729_vm6 = vcmp.eq.s32.totalorder %v1969_v36, %v2181_v30  ;;  %vm565_vm7 = vcmp.eq.f32.partialorder %v2160_v60, 0.0 }
 0x11b   :  { %v543_v45 = vsel %vm542_vm10, %v2092_v24, %v541_v20  ;;  %v534_v51 = vmul.f32 %v1348_v8, %v2104_v7  ;;  %v2214_v20 = vsel %vm508_vm9, 0.0, %v456_v61  ;;  %v410_v8 = vadd.f32 %v2075_v48, %v135_v19 }
 0x11c   :  { %v546_v16 = vsel %vm544_vm11, %v545_v41, %v543_v45  ;;  %v566_v2 = vand.u32 2147483648, %v2160_v60  ;;  %1359 = vrsqrt.f32 %v2214_v20  ;;  %vm570_vm8 = vcmp.eq.f32.partialorder %v2164_v29, inf }
 0x11d   :  { %v646_v34 = vsub.f32 1.0, %v546_v16  ;;  %v536_v12 = vsel %vm535_vm12, %v2104_v7, %v534_v51  ;;  %v138_v33 = vpop.xlane.xlu1 %137  ;;  %vm572_vm9 = vcmp.eq.f32.partialorder %v2164_v29, 0.0  ;;  %v457_v61 = vmax.f32 %v441_v54, 0.0 }
 0x11e   :  { %v1350_v41 = vpop.eup %1349  ;;  %v539_v22 = vsel %vm537_vm14, %v538_v11, %v536_v12  ;;  %v573_v51 = vand.u32 2147483648, %v2164_v29  ;;  %vm731_vm10 = vcmp.eq.s32.totalorder %v1967_v32, %v2181_v30  ;;  %vm577_vm11 = vcmp.eq.f32.partialorder %v2192_v62, inf }
 0x11f   :  { %v1352_v19 = vpop.eup %1351  ;;  %v662_v6 = vmax.f32 %v646_v34, 0.0  ;;  %v645_v21 = vsub.f32 1.0, %v539_v22  ;;  %v548_v45 = vmul.f32 %v1350_v41, %v2129_v42  ;;  %v2235_v11 = vsel %vm509_vm13, 0.0, %v457_v61 }
 0x120   :  { %v555_v16 = vmul.f32 %v1352_v19, %v2133_v47  ;;  %v442_v54 = vsub.f32 %v410_v8, %v2146_v25  ;;  %v411_v34 = vadd.f32 %v2075_v48, %v138_v33  ;;  %vm732_vm12 = vcmp.eq.s32.totalorder %v1976_v18, %v2181_v30 }
 0x121   :  { %v746_v12 = vmul.f32 %v662_v6, %v662_v6  ;;  %v661_v41 = vmax.f32 %v645_v21, 0.0  ;;  %v550_v22 = vsel %vm549_vm15, %v2129_v42, %v548_v45  ;;  %1361 = vrsqrt.f32 %v2235_v11  ;;  %v141_v19 = vpop.xlane.xlu1 %140 }
 0x122   :  { %v553_v38 = vsel %vm551_vm0, %v552_v63, %v550_v22  ;;  %v557_v25 = vsel %vm556_vm2, %v2133_v47, %v555_v16  ;;  %vm579_vm13 = vcmp.eq.f32.partialorder %v2192_v62, 0.0  ;;  %v580_v8 = vand.u32 2147483648, %v2192_v62  ;;  %v1354_v33 = vpop.eup %1353 }
 0x123   :  { %vm511_vm14 = vcmp.eq.s32.totalorder %v1962_v13, %v2122_v43  ;;  %v745_v61 = vmul.f32 %v661_v41, %v661_v41  ;;  %v647_v6 = vsub.f32 1.0, %v553_v38  ;;  %v560_v21 = vsel %vm558_vm1, %v559_v55, %v557_v25  ;;  %v1356_v63 = vpop.eup %1355 }
 0x124   :  { %vm584_vm15 = vcmp.eq.f32.partialorder %v2214_v20, inf  ;;  %v762_v45 = vsel %vm730_vm3, %v2092_v24, %v746_v12  ;;  %v648_v16 = vsub.f32 1.0, %v560_v21  ;;  %v562_v22 = vmul.f32 %v1354_v33, %v2160_v60 }
 0x125   :  { %v458_v56 = vmax.f32 %v442_v54, 0.0  ;;  %vm733_vm0 = vcmp.eq.s32.totalorder %v1980_v52, %v2181_v30  ;;  %v761_v55 = vsel %vm729_vm6, %v2104_v7, %v745_v61  ;;  %v663_v41 = vmax.f32 %v647_v6, 0.0  ;;  %v144_v57 = vpop.xlane.xlu1 %143  ;;  %v1272_v52 = vpop.f32.mrf.mxu1 }
 0x126   :  { %v569_v38 = vmul.f32 %v1356_v63, %v2164_v29  ;;  %v443_v25 = vsub.f32 %v411_v34, %v2176_v31  ;;  %vm734_vm2 = vcmp.eq.s32.totalorder %v1984_v59, %v2181_v30  ;;  %v777_v4 = vadd.f32 %v762_v45, %v761_v55 }
 0x127   :  { %v664_v24 = vmax.f32 %v648_v16, 0.0  ;;  %v564_v54 = vsel %vm563_vm4, %v2160_v60, %v562_v22  ;;  %v2278_v36 = vsel %vm510_vm5, 0.0, %v458_v56  ;;  %v747_v7 = vmul.f32 %v663_v41, %v663_v41  ;;  %v1358_v34 = vpop.eup %1357 }
 0x128   :  { %v567_v12 = vsel %vm565_vm7, %v566_v2, %v564_v54  ;;  %v571_v31 = vsel %vm570_vm8, %v2164_v29, %v569_v38  ;;  %1363 = vrsqrt.f32 %v2278_v36  ;;  %vm586_vm1 = vcmp.eq.f32.partialorder %v2214_v20, 0.0 }
 0x129   :  { %v748_v33 = vmul.f32 %v664_v24, %v664_v24  ;;  %v649_v61 = vsub.f32 1.0, %v567_v12  ;;  %v574_v6 = vsel %vm572_vm9, %v573_v51, %v571_v31  ;;  %v763_v56 = vsel %vm731_vm10, %v2129_v42, %v747_v7  ;;  %v1360_v63 = vpop.eup %1359  ;;  %v2304_v42 = vpop.xlane.xlu1 %900 }
 0x12a   :  { %v650_v10 = vsub.f32 1.0, %v574_v6  ;;  %v576_v2 = vmul.f32 %v1358_v34, %v2192_v62  ;;  %v587_v21 = vand.u32 2147483648, %v2214_v20  ;;  %vm512_vm3 = vcmp.eq.s32.totalorder %v1962_v13, %v2125_v23 }
 0x12b   :  { %vm735_vm4 = vcmp.eq.s32.totalorder %v1990_v14, %v2181_v30  ;;  %v778_v51 = vadd.f32 %v777_v4, %v763_v56  ;;  %v764_v45 = vsel %vm732_vm12, %v2133_v47, %v748_v33  ;;  %v665_v32 = vmax.f32 %v649_v61, 0.0 }
 0x12c   :  { %vm591_vm5 = vcmp.eq.f32.partialorder %v2235_v11, inf  ;;  %v666_v16 = vmax.f32 %v650_v10, 0.0  ;;  %v578_v22 = vsel %vm577_vm11, %v2192_v62, %v576_v2  ;;  %v583_v55 = vmul.f32 %v1360_v63, %v2214_v20 }
 0x12d   :  { %v459_v41 = vmax.f32 %v443_v25, 0.0  ;;  %v779_v38 = vadd.f32 %v778_v51, %v764_v45  ;;  %v749_v4 = vmul.f32 %v665_v32, %v665_v32  ;;  %v581_v24 = vsel %vm579_vm13, %v580_v8, %v578_v22  ;;  %v2331_v34 = vpop.xlane.xlu0 %903  ;;  %v147_v43 = vpop.xlane.xlu1 %146 }
 0x12e   :  { %v412_v18 = vadd.f32 %v2075_v48, %v141_v19  ;;  %v750_v47 = vmul.f32 %v666_v16, %v666_v16  ;;  %v651_v54 = vsub.f32 1.0, %v581_v24  ;;  %v585_v7 = vsel %vm584_vm15, %v2214_v20, %v583_v55  ;;  %v1362_v25 = vpop.eup %1361 }
 0x12f   :  { %v2319_v12 = vsel %vm511_vm14, 0.0, %v459_v41  ;;  %vm513_vm6 = vcmp.eq.s32.totalorder %v1962_v13, %v2140_v0  ;;  %v765_v19 = vsel %vm733_vm0, %v2160_v60, %v749_v4  ;;  %v588_v8 = vsel %vm586_vm1, %v587_v21, %v585_v7  ;;  %v386_v41 = vpop.f32.mrf.mxu1 }
 0x130   :  { %v594_v31 = vand.u32 2147483648, %v2235_v11  ;;  %1365 = vrsqrt.f32 %v2319_v12  ;;  %v780_v33 = vadd.f32 %v779_v38, %v765_v19  ;;  %v766_v61 = vsel %vm734_vm2, %v2164_v29, %v750_v47 }
 0x131   :  { %v667_v6 = vmax.f32 %v651_v54, 0.0  ;;  %v652_v56 = vsub.f32 1.0, %v588_v8  ;;  %v590_v60 = vmul.f32 %v1362_v25, %v2235_v11  ;;  %vm593_vm7 = vcmp.eq.f32.partialorder %v2235_v11, 0.0  ;;  %v2347_v16 = vpop.xlane.xlu0 %906  ;;  %v150_v22 = vpop.xlane.xlu1 %149 }
 0x132   :  { %v444_v10 = vsub.f32 %v412_v18, %v2171_v53  ;;  %v430_v2 = vmul.f32 2.0, %v2152_v15  ;;  %v781_v21 = vadd.f32 %v780_v33, %v766_v61  ;;  %v413_v45 = vadd.f32 %v2075_v48, %v144_v57 }
 0x133   :  { %v751_v63 = vmul.f32 %v667_v6, %v667_v6  ;;  %v668_v51 = vmax.f32 %v652_v56, 0.0  ;;  %v592_v59 = vsel %vm591_vm5, %v2235_v11, %v590_v60  ;;  %vm598_vm8 = vcmp.eq.f32.partialorder %v2278_v36, inf }
 0x134   :  { %v601_v29 = vand.u32 2147483648, %v2278_v36  ;;  %v460_v32 = vmax.f32 %v444_v10, 0.0  ;;  %v595_v53 = vsel %vm593_vm7, %v594_v31, %v592_v59  ;;  %v445_v57 = vsub.f32 %v413_v45, %v2194_v26 }
 0x135   :  { %v767_v15 = vsel %vm735_vm4, %v2192_v62, %v751_v63  ;;  %v414_v55 = vadd.f32 %v2075_v48, %v147_v43  ;;  %v1364_v38 = vpop.eup %1363  ;;  %v752_v24 = vmul.f32 %v668_v51, %v668_v51  ;;  %v653_v18 = vsub.f32 1.0, %v595_v53  ;;  %v2369_v23 = vpop.xlane.xlu0 %909 }
 0x136   :  { %v782_v4 = vadd.f32 %v781_v21, %v767_v15  ;;  %v2358_v47 = vsel %vm512_vm3, 0.0, %v460_v32  ;;  %v597_v54 = vmul.f32 %v1364_v38, %v2278_v36  ;;  %vm600_vm9 = vcmp.eq.f32.partialorder %v2278_v36, 0.0  ;;  %v153_v8 = vpop.xlane.xlu1 %152 }
 0x137   :  { %1367 = vrsqrt.f32 %v2358_v47  ;;  %vm514_vm10 = vcmp.eq.s32.totalorder %v1962_v13, %v2143_v58  ;;  %vm736_vm11 = vcmp.eq.s32.totalorder %v1994_v37, %v2181_v30  ;;  %v461_v62 = vmax.f32 %v445_v57, 0.0 }
 0x138   :  { %v431_v14 = vmul.f32 2.0, %v386_v41  ;;  %vm515_vm12 = vcmp.eq.s32.totalorder %v1962_v13, %v2149_v39  ;;  %v669_v26 = vmax.f32 %v653_v18, 0.0  ;;  %v599_v7 = vsel %vm598_vm8, %v2278_v36, %v597_v54 }
 0x139   :  { %v446_v25 = vsub.f32 %v414_v55, %v430_v2  ;;  %v415_v19 = vadd.f32 %v2075_v48, %v150_v22  ;;  %v768_v31 = vsel %vm736_vm11, %v2214_v20, %v752_v24  ;;  %v602_v43 = vsel %vm600_vm9, %v601_v29, %v599_v7  ;;  %v2386_v10 = vpop.xlane.xlu0 %912 }
 0x13a   :  { %v2379_v37 = vsel %vm513_vm6, 0.0, %v461_v62  ;;  %v432_v33 = vmul.f32 2.0, %v1272_v52  ;;  %v654_v61 = vsub.f32 1.0, %v602_v43  ;;  %vm605_vm13 = vcmp.eq.f32.partialorder %v2319_v12, inf }
 0x13b   :  { %1369 = vrsqrt.f32 %v2379_v37  ;;  %v481_v6 = vadd.s32 120, %v2078_v49  ;;  %vm607_vm14 = vcmp.eq.f32.partialorder %v2319_v12, 0.0  ;;  %v462_v56 = vmax.f32 %v446_v25, 0.0 }
 0x13c   :  { %v447_v60 = vsub.f32 %v415_v19, %v431_v14  ;;  %v416_v20 = vadd.f32 %v2075_v48, %v153_v8  ;;  %v753_v0 = vmul.f32 %v669_v26, %v669_v26  ;;  %v608_v21 = vand.u32 2147483648, %v2319_v12 }
 0x13d   :  { %v1366_v2 = vpop.eup %1365  ;;  %v670_v52 = vmax.f32 %v654_v61, 0.0  ;;  %v783_v63 = vadd.f32 %v782_v4, %v768_v31  ;;  %v2393_v49 = vsel %vm514_vm10, 0.0, %v462_v56  ;;  %vm516_vm15 = vcmp.eq.s32.totalorder %v1962_v13, %v481_v6  ;;  %v2397_v48 = vpop.xlane.xlu1 %1028 }
 0x13e   :  { %v604_v51 = vmul.f32 %v1366_v2, %v2319_v12  ;;  %v463_v45 = vmax.f32 %v447_v60, 0.0  ;;  %v448_v59 = vsub.f32 %v416_v20, %v432_v33  ;;  %1371 = vrsqrt.f32 %v2393_v49  ;;  %v2407_v22 = vpop.xlane.xlu0 %915 }
 0x13f   :  { %vm737_vm0 = vcmp.eq.s32.totalorder %v2035_v28, %v2181_v30  ;;  %v754_v53 = vmul.f32 %v670_v52, %v670_v52  ;;  %vm738_vm2 = vcmp.eq.s32.totalorder %v1988_v9, %v2181_v30  ;;  %vm612_vm1 = vcmp.eq.f32.partialorder %v2358_v47, inf }
 0x140   :  { %v606_v29 = vsel %vm605_vm13, %v2319_v12, %v604_v51  ;;  %v2405_v32 = vsel %vm515_vm12, 0.0, %v463_v45  ;;  %v464_v58 = vmax.f32 %v448_v59, 0.0  ;;  %v769_v55 = vsel %vm737_vm0, %v2235_v11, %v753_v0 }
 0x141   :  { %1373 = vrsqrt.f32 %v2405_v32  ;;  %v609_v15 = vsel %vm607_vm14, %v608_v21, %v606_v29  ;;  %v615_v28 = vand.u32 2147483648, %v2358_v47  ;;  %v2424_v41 = vpop.xlane.xlu1 %933  ;;  %vm614_vm3 = vcmp.eq.f32.partialorder %v2358_v47, 0.0 }
 0x142   :  { %v2414_v57 = vsel %vm516_vm15, 0.0, %v464_v58  ;;  %v2422_v39 = vpop.xlane.xlu0 %918  ;;  %v655_v38 = vsub.f32 1.0, %v609_v15  ;;  %v770_v11 = vsel %vm738_vm2, %v2278_v36, %v754_v53  ;;  %v784_v24 = vadd.f32 %v783_v63, %v769_v55 }
 0x143   :  { %1375 = vrsqrt.f32 %v2414_v57  ;;  %vm619_vm4 = vcmp.eq.f32.partialorder %v2379_v37, inf  ;;  %v622_v14 = vand.u32 2147483648, %v2379_v37  ;;  %vm621_vm5 = vcmp.eq.f32.partialorder %v2379_v37, 0.0 }
 0x144   :  { %v1368_v13 = vpop.eup %1367  ;;  %v671_v18 = vmax.f32 %v655_v38, 0.0  ;;  %1377 = vlog2.f32 %v2304_v42  ;;  %v785_v9 = vadd.f32 %v784_v24, %v770_v11  ;;  %vm740_vm6 = vcmp.eq.s32.totalorder %v2001_v40, %v2181_v30 }
 0x145   :  { %v611_v4 = vmul.f32 %v1368_v13, %v2358_v47  ;;  %1379 = vlog2.f32 %v2331_v34  ;;  %vm739_vm7 = vcmp.eq.s32.totalorder %v2046_v3, %v2181_v30  ;;  %v2441_v42 = vpop.xlane.xlu1 %936  ;;  %vm626_vm8 = vcmp.eq.f32.partialorder %v2393_v49, inf }
 0x146   :  { %v922_v26 = vpop.xlane.xlu0 %921  ;;  %v755_v19 = vmul.f32 %v671_v18, %v671_v18  ;;  %1381 = vlog2.f32 %v2347_v16  ;;  %v629_v6 = vand.u32 2147483648, %v2393_v49  ;;  %vm628_vm9 = vcmp.eq.f32.partialorder %v2393_v49, 0.0 }
 0x147   :  { %v613_v54 = vsel %vm612_vm1, %v2358_v47, %v611_v4  ;;  %1383 = vlog2.f32 %v2369_v23  ;;  %vm633_vm10 = vcmp.eq.f32.partialorder %v2405_v32, inf  ;;  %vm635_vm11 = vcmp.eq.f32.partialorder %v2405_v32, 0.0 }
 0x148   :  { %v1370_v62 = vpop.eup %1369  ;;  %v616_v7 = vsel %vm614_vm3, %v615_v28, %v613_v54  ;;  %v771_v31 = vsel %vm739_vm7, %v2319_v12, %v755_v19  ;;  %1385 = vlog2.f32 %v2386_v10  ;;  %v636_v12 = vand.u32 2147483648, %v2405_v32 }
 0x149   :  { %v618_v25 = vmul.f32 %v1370_v62, %v2379_v37  ;;  %v656_v36 = vsub.f32 1.0, %v616_v7  ;;  %v786_v3 = vadd.f32 %v785_v9, %v771_v31  ;;  %v2462_v63 = vpop.xlane.xlu1 %939  ;;  %vm640_vm12 = vcmp.eq.f32.partialorder %v2414_v57, inf }
 0x14a   :  { %v2446_v33 = vpop.xlane.xlu0 %924  ;;  %v643_v45 = vand.u32 2147483648, %v2414_v57  ;;  %vm642_vm13 = vcmp.eq.f32.partialorder %v2414_v57, 0.0  ;;  %vm741_vm14 = vcmp.eq.s32.totalorder %v2054_v27, %v2181_v30  ;;  %1387 = vlog2.f32 %v2407_v22 }
 0x14b   :  { %v620_v34 = vsel %vm619_vm4, %v2379_v37, %v618_v25  ;;  %v672_v8 = vmax.f32 %v656_v36, 0.0  ;;  %v1372_v43 = vpop.eup %1371  ;;  %1389 = vlog2.f32 %v922_v26  ;;  %vm742_vm15 = vcmp.eq.s32.totalorder %v2011_v5, %v2181_v30 }
 0x14c   :  { %v623_v61 = vsel %vm621_vm5, %v622_v14, %v620_v34  ;;  %v625_v16 = vmul.f32 %v1372_v43, %v2393_v49  ;;  %1391 = vlog2.f32 %v2422_v39  ;;  %vm743_vm0 = vcmp.eq.s32.totalorder %v2063_v17, %v2181_v30 }
 0x14d   :  { %v657_v56 = vsub.f32 1.0, %v623_v61  ;;  %v756_v23 = vmul.f32 %v672_v8, %v672_v8  ;;  %v943_v9 = vpop.xlane.xlu1 %942  ;;  %vm744_vm2 = vcmp.eq.s32.totalorder %v2028_v1, %v2181_v30  ;;  %vm1091_vm1 = vcmask 7168  }
 0x14e   :  { %v1374_v60 = vpop.eup %1373  ;;  %v627_v20 = vsel %vm626_vm8, %v2393_v49, %v625_v16  ;;  %v928_v10 = vpop.xlane.xlu0 %927 }
 0x14f   :  { %v632_v2 = vmul.f32 %v1374_v60, %v2405_v32  ;;  %v673_v0 = vmax.f32 %v657_v56, 0.0  ;;  %v772_v21 = vsel %vm740_vm6, %v2358_v47, %v756_v23  ;;  %v630_v51 = vsel %vm628_vm9, %v629_v6, %v627_v20 }
 0x150   :  { %v1376_v52 = vpop.eup %1375  ;;  %v787_v59 = vadd.f32 %v786_v3, %v772_v21  ;;  %v658_v15 = vsub.f32 1.0, %v630_v51  ;;  %1393 = vlog2.f32 %v928_v10 }
 0x151   :  { %v634_v29 = vsel %vm633_vm10, %v2405_v32, %v632_v2  ;;  %v639_v58 = vmul.f32 %v1376_v52, %v2414_v57  ;;  %v757_v47 = vmul.f32 %v673_v0, %v673_v0  ;;  %v1378_v28 = vpop.eup %1377  ;;  %1395 = vlog2.f32 %v2446_v33  ;;  %v946_v61 = vpop.xlane.xlu1 %945  ;;  %v2556_v0 = vld [vmem:[#allocation6_spill] sm:$0xff] }
 0x152   :  { %v637_v40 = vsel %vm635_vm11, %v636_v12, %v634_v29  ;;  %v674_v13 = vmax.f32 %v658_v15, 0.0  ;;  %v931_v38 = vpop.xlane.xlu0 %930  ;;  %v1380_v24 = vpop.eup %1379  ;;  %v948_v8 = vmul.f32 0.6931472, %v1378_v28  ;;  %1397 = vlog2.f32 %v2424_v41  ;;  %v2557_v29 = vld [vmem:[#allocation5_spill] sm:$0xff] }
 0x153   :  { %v641_v53 = vsel %vm640_vm12, %v2414_v57, %v639_v58  ;;  %v659_v55 = vsub.f32 1.0, %v637_v40  ;;  %v773_v11 = vsel %vm741_vm14, %v2379_v37, %v757_v47  ;;  %v1382_v22 = vpop.eup %1381  ;;  %v950_v19 = vmul.f32 0.6931472, %v1380_v24 }
 0x154   :  { %v644_v4 = vsel %vm642_vm13, %v643_v45, %v641_v53  ;;  %v758_v27 = vmul.f32 %v674_v13, %v674_v13  ;;  %v788_v62 = vadd.f32 %v787_v59, %v773_v11  ;;  %v1384_v36 = vpop.eup %1383  ;;  %v952_v43 = vmul.f32 0.6931472, %v1382_v22  ;;  %v2558_v13 = vld [vmem:[#allocation7_spill] sm:$0xff] }
 0x155   :  { %v660_v18 = vsub.f32 1.0, %v644_v4  ;;  %v675_v54 = vmax.f32 %v659_v55, 0.0  ;;  %v1386_v31 = vpop.eup %1385  ;;  %v954_v3 = vmul.f32 0.6931472, %v1384_v36  ;;  %v980_v16 = vadd.f32 %v950_v19, %v1887_v35 }
 0x156   :  { %v774_v25 = vsel %vm742_vm15, %v2393_v49, %v758_v27  ;;  %v1032_v37 = vpop.xlane.xlu0 %1031  ;;  %v979_v56 = vadd.f32 %v948_v8, %v1876_v44  ;;  %v956_v1 = vmul.f32 0.6931472, %v1386_v31  ;;  %1399 = vlog2.f32 %v931_v38  ;;  %v1050_v44 = vpop.xlane.xlu1 %1049  ;;  %v2559_v27 = vld [vmem:[#allocation8_spill] sm:$0xff] }
 0x157   :  { %v676_v14 = vmax.f32 %v660_v18, 0.0  ;;  %v759_v7 = vmul.f32 %v675_v54, %v675_v54  ;;  %v789_v26 = vadd.f32 %v788_v62, %v774_v25  ;;  %v1076_v30 = vsub.f32 %v980_v16, %v1032_v37  ;;  %v1388_v23 = vpop.eup %1387  ;;  %v2560_v25 = vld [vmem:[#allocation9_spill] sm:$0xff] }
 0x158   :  { %1401 = vlog2.f32 %v2441_v42  ;;  %v982_v12 = vadd.f32 %v954_v3, %v1885_v50  ;;  %v1390_v35 = vpop.eup %1389  ;;  %v958_v41 = vmul.f32 0.6931472, %v1388_v23  ;;  %v2562_v23 = vld [vmem:[#allocation11_spill] sm:$0xff] }
 0x159   :  { %v760_v34 = vmul.f32 %v676_v14, %v676_v14  ;;  %v775_v5 = vsel %vm743_vm0, %v2405_v32, %v759_v7  ;;  %v981_v32 = vadd.f32 %v952_v43, %v1874_v46  ;;  %1403 = vlog2.f32 %v2462_v63  ;;  %v1392_v21 = vpop.eup %1391  ;;  %v2561_v43 = vld [vmem:[#allocation10_spill] sm:$0xff] }
 0x15a   :  { %v790_v39 = vadd.f32 %v789_v26, %v775_v5  ;;  %v1035_v6 = vpop.xlane.xlu0 %1034  ;;  %v1093_v20 = vsel %vm1091_vm1, %v1076_v30, 0.0  ;;  %v983_v46 = vadd.f32 %v956_v1, %v2556_v0  ;;  %v962_v10 = vmul.f32 0.6931472, %v1390_v35  ;;  %v1056_v47 = vpop.xlane.xlu1 %1055 }
 0x15b   :  { %v776_v49 = vsel %vm744_vm2, %v2414_v57, %v760_v34  ;;  %v1075_v57 = vsub.f32 %v979_v56, %v2397_v48  ;;  %v1077_v60 = vsub.f32 %v981_v32, %v1035_v6  ;;  %1405 = vlog2.f32 %v943_v9 }
 0x15c   :  { %v791_v17 = vadd.f32 %v790_v39, %v776_v49  ;;  %v960_v59 = vmul.f32 0.6931472, %v1392_v21  ;;  %1407 = vlog2.f32 %v946_v61  ;;  %v984_v58 = vadd.f32 %v958_v41, %v2557_v29 }
 0x15d   :  { %v1092_v48 = vsel %vm1091_vm1, %v1075_v57, 0.0  ;;  %v1095_v42 = vsel %vm1091_vm1, %v1077_v60, 0.0  ;;  %v1394_v50 = vpop.eup %1393  ;;  %v986_v28 = vadd.f32 %v962_v10, %v2558_v13  ;;  %v2563_v60 = vld [vmem:[#allocation12_spill] sm:$0xff] }
 0x15e   :  { %792 = vadd.xlane.f32.xlu0 %v791_v17  ;;  %v1038_v33 = vpop.xlane.xlu0 %1037  ;;  %v1094_v45 = vadd.f32 %v1093_v20, %v1092_v48  ;;  %v1396_v15 = vpop.eup %1395  ;;  %v966_v55 = vmul.f32 0.6931472, %v1394_v50  ;;  %v985_v9 = vadd.f32 %v960_v59, %v2559_v27 }
 0x15f   :  { %v1078_v2 = vsub.f32 %v982_v12, %v1038_v33  ;;  %v1398_v24 = vpop.eup %1397  ;;  %v964_v18 = vmul.f32 0.6931472, %v1396_v15  ;;  %v1082_v7 = vsub.f32 %v986_v28, %v1050_v44  ;;  %v1062_v19 = vpop.xlane.xlu1 %1061  ;;  %v2567_v28 = vld [vmem:[#allocation16_spill] sm:$0xff] }
 0x160   :  { %v1096_v40 = vadd.f32 %v1095_v42, %v1094_v45  ;;  %v988_v36 = vadd.f32 %v966_v55, %v2560_v25  ;;  %v970_v8 = vmul.f32 0.6931472, %v1398_v24 }
 0x161   :  { %v1097_v63 = vsel %vm1091_vm1, %v1078_v2, 0.0  ;;  %v987_v49 = vadd.f32 %v964_v18, %v2561_v43  ;;  %v1105_v6 = vsel %vm1091_vm1, %v1082_v7, 0.0 }
 0x162   :  { %v1041_v52 = vpop.xlane.xlu0 %1040  ;;  %v1098_v11 = vadd.f32 %v1097_v63, %v1096_v40  ;;  %v1084_v3 = vsub.f32 %v988_v36, %v1056_v47  ;;  %v990_v33 = vadd.f32 %v970_v8, %v2562_v23 }
 0x163   :  { %v1079_v51 = vsub.f32 %v983_v46, %v1041_v52  ;;  %v1400_v62 = vpop.eup %1399  ;;  %v1068_v44 = vpop.xlane.xlu1 %1067  ;;  %v2564_v52 = vld [vmem:[#allocation14_spill] sm:$0xff] }
 0x164   :  { %v968_v39 = vmul.f32 0.6931472, %v1400_v62  ;;  %v1109_v2 = vsel %vm1091_vm1, %v1084_v3, 0.0  ;;  %v1086_v0 = vsub.f32 %v990_v33, %v1062_v19 }
 0x165   :  { %v1099_v38 = vsel %vm1091_vm1, %v1079_v51, 0.0  ;;  %v1402_v26 = vpop.eup %1401  ;;  %v2565_v51 = vld [vmem:[#allocation13_spill] sm:$0xff] }
 0x166   :  { %v1044_v53 = vpop.xlane.xlu0 %1043  ;;  %v1100_v22 = vadd.f32 %v1099_v38, %v1098_v11  ;;  %v1404_v5 = vpop.eup %1403  ;;  %v972_v56 = vmul.f32 0.6931472, %v1402_v26  ;;  %v989_v12 = vadd.f32 %v968_v39, %v2563_v60  ;;  %v1113_v29 = vsel %vm1091_vm1, %v1086_v0, 0.0 }
 0x167   :  { %v1080_v4 = vsub.f32 %v984_v58, %v1044_v53  ;;  %v974_v32 = vmul.f32 0.6931472, %v1404_v5  ;;  %v1074_v40 = vpop.xlane.xlu1 %1073  ;;  %v2566_v53 = vld [vmem:[#allocation15_spill] sm:$0xff] }
 0x168   :  { %v1406_v30 = vpop.eup %1405  ;;  %v991_v48 = vadd.f32 %v972_v56, %v2564_v52 }
 0x169   :  { %v1101_v54 = vsel %vm1091_vm1, %v1080_v4, 0.0  ;;  %v1408_v35 = vpop.eup %1407  ;;  %v976_v10 = vmul.f32 0.6931472, %v1406_v30  ;;  %v992_v50 = vadd.f32 %v974_v32, %v2565_v51 }
 0x16a   :  { %v1047_v14 = vpop.xlane.xlu0 %1046  ;;  %v1102_v34 = vadd.f32 %v1101_v54, %v1100_v22  ;;  %v978_v42 = vmul.f32 0.6931472, %v1408_v35 }
 0x16b   :  { %v1081_v37 = vsub.f32 %v985_v9, %v1047_v14  ;;  %v1088_v58 = vsub.f32 %v992_v50, %v1068_v44  ;;  %v993_v38 = vadd.f32 %v976_v10, %v2567_v28 }
 0x16c   :  { %v994_v55 = vadd.f32 %v978_v42, %v2566_v53 }
 0x16d   :  { %v1103_v31 = vsel %vm1091_vm1, %v1081_v37, 0.0  ;;  %v1117_v24 = vsel %vm1091_vm1, %v1088_v58, 0.0 }
 0x16e   :  { %v1104_v61 = vadd.f32 %v1103_v31, %v1102_v34  ;;  %v1053_v17 = vpop.xlane.xlu0 %1052  ;;  %v1090_v18 = vsub.f32 %v994_v55, %v1074_v40 }
 0x16f   :  { %v1083_v16 = vsub.f32 %v987_v49, %v1053_v17 }
 0x170   :  { %v1106_v1 = vadd.f32 %v1105_v6, %v1104_v61  ;;  %v1121_v22 = vsel %vm1091_vm1, %v1090_v18, 0.0 }
 0x171   :  { %v1107_v57 = vsel %vm1091_vm1, %v1083_v16, 0.0 }
 0x172   :  { %v1108_v41 = vadd.f32 %v1107_v57, %v1106_v1  ;;  %v1059_v20 = vpop.xlane.xlu0 %1058 }
 0x173   :  { %v1085_v46 = vsub.f32 %v989_v12, %v1059_v20 }
 0x174   :  { %v1110_v21 = vadd.f32 %v1109_v2, %v1108_v41 }
 0x175   :  { %v1111_v45 = vsel %vm1091_vm1, %v1085_v46, 0.0 }
 0x176   :  { %v1112_v59 = vadd.f32 %v1111_v45, %v1110_v21  ;;  %v1065_v63 = vpop.xlane.xlu0 %1064 }
 0x177   :  { %v1087_v15 = vsub.f32 %v991_v48, %v1065_v63 }
 0x178   :  { %v1114_v47 = vadd.f32 %v1113_v29, %v1112_v59 }
 0x179   :  { %v1115_v13 = vsel %vm1091_vm1, %v1087_v15, 0.0 }
 0x17a   :  { %v1116_v4 = vadd.f32 %v1115_v13, %v1114_v47  ;;  %v1071_v11 = vpop.xlane.xlu0 %1070 }
 0x17b   :  { %v1089_v54 = vsub.f32 %v993_v38, %v1071_v11 }
 0x17c   :  { %v1118_v27 = vadd.f32 %v1117_v24, %v1116_v4 }
 0x17d   :  { %v1119_v9 = vsel %vm1091_vm1, %v1089_v54, 0.0 }
 0x17e   :  { %v1120_v62 = vadd.f32 %v1119_v9, %v1118_v27 }
 0x180   :  { %v1122_v14 = vadd.f32 %v1121_v22, %v1120_v62 }
 0x182   :  { %1123 = vadd.xlane.f32.xlu1 %v1122_v14 }
 0x1e7   :  { %v793_v7 = vpop.xlane.xlu0 %792 }
 0x1e8   :  { %v794_v25 = vrot.slane %v793_v7, 4 }
 0x1ea   :  { %v795_v36 = vadd.f32 %v794_v25, %v793_v7 }
 0x1ec   :  { %v796_v37 = vrot.slane %v795_v36, 2 }
 0x1ee   :  { %v797_v26 = vadd.f32 %v796_v37, %v795_v36 }
 0x1f0   :  { %v798_v19 = vrot.slane %v797_v26, 1 }
 0x1f2   :  { %v799_v34 = vadd.f32 %v798_v19, %v797_v26 }
 0x1f4   :  { %1305 = vpush %v799_v34 }
 0x20b   :  { %v1124_v5 = vpop.xlane.xlu1 %1123 }
 0x20c   :  { %v1125_v8 = vrot.slane %v1124_v5, 4 }
 0x20e   :  { %v1126_v39 = vadd.f32 %v1125_v8, %v1124_v5 }
 0x210   :  { %v1127_v31 = vrot.slane %v1126_v39, 2 }
 0x212   :  { %v1128_v43 = vadd.f32 %v1127_v31, %v1126_v39 }
 0x214   :  { %v1129_v49 = vrot.slane %v1128_v43, 1 }
 0x216   :  { %v1130_v61 = vadd.f32 %v1129_v49, %v1128_v43 }
 0x218   :  { %1307 = vpush %v1130_v61 }
 0x225   :  { %s1306_s3 = spop %1305 }
 0x226   :  { %v801_v17 = vstv %s1306_s3 }
 0x227   :  { %v1134_v3 = vmul.f32 2.7682087e-05, %v801_v17 }
 0x249   :  { %s1308_s13 = spop %1307 }
 0x24a   :  { %v1132_v6 = vstv %s1308_s13 }
 0x24b   :  { %v1133_v16 = vmul.f32 0.00078125, %v1132_v6 }
 0x24d   :  { %v1135_v56 = vadd.f32 %v1134_v3, %v1133_v16 }
 0x24f   :  { %1136 = vst [vmem:[#allocation2] sm:$0xff] %v1135_v56 }
 0x250   :  { %1420 = shalt.err (!%p1417_p4)
}
 0x251   :  { %1146 = dma.vmem_to_hbm [thread:$0]  %s1144_s15, 128, %s2531_s5, [#allocation3]  }
 0x252   :  { %1429 = dma.done.wait [#allocation3], 128  }
 0x253   :  { %1430 = vsyncadd [#allocation3], 4294967168 }
 0x254   :  { %1150 = vsyncpa [#allocation3], 1 }

</bundles_post_ra>
